<compile_context>
chip_gen: v7x
topology: tpu7x:2x2x1
jax: 0.10.0
libtpu: 0.0.40
codegen_flags: <defaults>
</compile_context>

<pallas_src>
import functools
import math

import jax
import jax.numpy as jnp
from jax.experimental import pallas as pl
from jax.experimental.pallas import tpu as pltpu


# ---------------------------------------------------------------------------
# helpers
# ---------------------------------------------------------------------------
def _round_up(x, m):
    return (x + m - 1) // m * m


def _pick_tm(m, cap=128):
    """Row-tile size: multiple of 8, capped at 128 (MXU-friendly)."""
    return min(cap, _round_up(m, 8))


def _gelu_new(x):
    # HuggingFace / modelscope ACT2FN['gelu_new']
    return 0.5 * x * (1.0 + jnp.tanh(
        math.sqrt(2.0 / math.pi) * (x + 0.044715 * x * x * x)))


# ---------------------------------------------------------------------------
# kernel: emb * sqrt(D) + positional encoding
# ---------------------------------------------------------------------------
def _scale_posenc_kernel(emb_ref, pe_ref, o_ref, *, scale):
    o_ref[0] = emb_ref[0] * scale + pe_ref[...]


def scale_add_posenc(emb, pe):
    b, t, d = emb.shape
    return pl.pallas_call(
        functools.partial(_scale_posenc_kernel, scale=math.sqrt(d)),
        out_shape=jax.ShapeDtypeStruct((b, t, d), emb.dtype),
        grid_spec=pltpu.PrefetchScalarGridSpec(
            num_scalar_prefetch=0,
            grid=(b,),
            in_specs=[pl.BlockSpec((1, t, d), lambda i: (i, 0, 0)),
                      pl.BlockSpec((t, d), lambda i: (0, 0))],
            out_specs=pl.BlockSpec((1, t, d), lambda i: (i, 0, 0))),
        compiler_params=pltpu.CompilerParams(
            dimension_semantics=("parallel",)),
    )(emb, pe[:t])


# ---------------------------------------------------------------------------
# kernel: LayerNorm (eps=1e-6, matches torch.nn.LayerNorm)
# ---------------------------------------------------------------------------
def _layernorm_kernel(x_ref, g_ref, b_ref, o_ref, *, eps):
    x = x_ref[...].astype(jnp.float32)
    mu = jnp.mean(x, axis=-1, keepdims=True)
    xc = x - mu
    var = jnp.mean(xc * xc, axis=-1, keepdims=True)
    y = xc * jax.lax.rsqrt(var + eps) * g_ref[...] + b_ref[...]
    o_ref[...] = y.astype(o_ref.dtype)


def layernorm(x2d, gamma, beta, *, eps=1e-6):
    m, d = x2d.shape
    tm = _pick_tm(m)
    mp = _round_up(m, tm)
    pad = mp - m
    xp = jnp.pad(x2d, ((0, pad), (0, 0))) if pad else x2d
    out = pl.pallas_call(
        functools.partial(_layernorm_kernel, eps=eps),
        out_shape=jax.ShapeDtypeStruct((mp, d), x2d.dtype),
        grid_spec=pltpu.PrefetchScalarGridSpec(
            num_scalar_prefetch=0,
            grid=(mp // tm,),
            in_specs=[pl.BlockSpec((tm, d), lambda i: (i, 0)),
                      pl.BlockSpec((1, d), lambda i: (0, 0)),
                      pl.BlockSpec((1, d), lambda i: (0, 0))],
            out_specs=pl.BlockSpec((tm, d), lambda i: (i, 0))),
        compiler_params=pltpu.CompilerParams(
            dimension_semantics=("parallel",)),
    )(xp, gamma.reshape(1, d), beta.reshape(1, d))
    return out[:m]


# ---------------------------------------------------------------------------
# kernel: Linear (bias, optional gelu_new activation, optional fused residual)
# ---------------------------------------------------------------------------
def _linear_kernel(*refs, activation, add_residual):
    if add_residual:
        x_ref, w_ref, b_ref, r_ref, o_ref = refs
    else:
        x_ref, w_ref, b_ref, o_ref = refs
        r_ref = None
    y = jnp.dot(x_ref[...].astype(jnp.float32), w_ref[...].astype(jnp.float32),
                preferred_element_type=jnp.float32) + b_ref[...]
    if activation == "gelu_new":
        y = _gelu_new(y)
    if add_residual:
        y = y + r_ref[...].astype(jnp.float32)
    o_ref[...] = y.astype(o_ref.dtype)


def linear(x2d, w, b, *, activation=None, residual=None):
    m, k = x2d.shape
    kk, n = w.shape
    assert kk == k
    tm = _pick_tm(m)
    mp = _round_up(m, tm)
    pad = mp - m
    xp = jnp.pad(x2d, ((0, pad), (0, 0))) if pad else x2d
    args = [xp, w, b.reshape(1, n)]
    in_specs = [pl.BlockSpec((tm, k), lambda i: (i, 0)),
                pl.BlockSpec((k, n), lambda i: (0, 0)),
                pl.BlockSpec((1, n), lambda i: (0, 0))]
    if residual is not None:
        rp = jnp.pad(residual, ((0, pad), (0, 0))) if pad else residual
        args.append(rp)
        in_specs.append(pl.BlockSpec((tm, n), lambda i: (i, 0)))
    out = pl.pallas_call(
        functools.partial(_linear_kernel, activation=activation,
                          add_residual=residual is not None),
        out_shape=jax.ShapeDtypeStruct((mp, n), x2d.dtype),
        grid_spec=pltpu.PrefetchScalarGridSpec(
            num_scalar_prefetch=0,
            grid=(mp // tm,),
            in_specs=in_specs,
            out_specs=pl.BlockSpec((tm, n), lambda i: (i, 0))),
        compiler_params=pltpu.CompilerParams(
            dimension_semantics=("parallel",)),
    )(*args)
    return out[:m]


# ---------------------------------------------------------------------------
# kernel: masked multi-head attention core (per batch, per head)
# ---------------------------------------------------------------------------
def _mha_core_kernel(q_ref, k_ref, v_ref, mask_ref, ctx_ref, attn_ref, *, scale):
    q = q_ref[0, 0].astype(jnp.float32) * scale
    k = k_ref[0, 0].astype(jnp.float32)
    v = v_ref[0, 0].astype(jnp.float32)
    scores = jnp.dot(q, k.T, preferred_element_type=jnp.float32)
    scores = jnp.where(mask_ref[0] != 0, -1e18, scores)      # masked_fill
    mx = jnp.max(scores, axis=-1, keepdims=True)
    p = jnp.exp(scores - mx)
    attn = p / jnp.sum(p, axis=-1, keepdims=True)
    attn_ref[0, 0] = attn.astype(attn_ref.dtype)
    ctx_ref[0, 0] = jnp.dot(attn, v,
                            preferred_element_type=jnp.float32).astype(ctx_ref.dtype)


def mha_core(q, k, v, mask, *, scale):
    """q: (B,H,Tq,Dh)  k,v: (B,H,Tk,Dh)  mask: (B,Tq,Tk) int32 (1 = masked)."""
    b, h, tq, dh = q.shape
    tk = k.shape[2]
    ctx, attn = pl.pallas_call(
        functools.partial(_mha_core_kernel, scale=scale),
        out_shape=[jax.ShapeDtypeStruct((b, h, tq, dh), jnp.float32),
                   jax.ShapeDtypeStruct((b, h, tq, tk), jnp.float32)],
        grid_spec=pltpu.PrefetchScalarGridSpec(
            num_scalar_prefetch=0,
            grid=(b, h),
            in_specs=[pl.BlockSpec((1, 1, tq, dh), lambda bi, hi: (bi, hi, 0, 0)),
                      pl.BlockSpec((1, 1, tk, dh), lambda bi, hi: (bi, hi, 0, 0)),
                      pl.BlockSpec((1, 1, tk, dh), lambda bi, hi: (bi, hi, 0, 0)),
                      pl.BlockSpec((1, tq, tk), lambda bi, hi: (bi, 0, 0))],
            out_specs=[pl.BlockSpec((1, 1, tq, dh), lambda bi, hi: (bi, hi, 0, 0)),
                       pl.BlockSpec((1, 1, tq, tk), lambda bi, hi: (bi, hi, 0, 0))]),
        compiler_params=pltpu.CompilerParams(
            dimension_semantics=("parallel", "parallel")),
    )(q, k, v, mask)
    return ctx, attn


# ---------------------------------------------------------------------------
# kernel: fused PositionwiseFeedForward (LN -> W1 -> gelu_new -> W2 -> +x)
# ---------------------------------------------------------------------------
def _ffn_kernel(x_ref, g_ref, bt_ref, w1_ref, b1_ref, w2_ref, b2_ref, o_ref, *, eps):
    x = x_ref[...].astype(jnp.float32)
    mu = jnp.mean(x, axis=-1, keepdims=True)
    xc = x - mu
    var = jnp.mean(xc * xc, axis=-1, keepdims=True)
    h = xc * jax.lax.rsqrt(var + eps) * g_ref[...] + bt_ref[...]
    inter = _gelu_new(jnp.dot(h, w1_ref[...],
                              preferred_element_type=jnp.float32) + b1_ref[...])
    y = jnp.dot(inter, w2_ref[...], preferred_element_type=jnp.float32) + b2_ref[...]
    o_ref[...] = (y + x).astype(o_ref.dtype)


def ffn(x2d, gamma, beta, w1, b1, w2, b2, *, eps=1e-6):
    m, d = x2d.shape
    dff = w1.shape[1]
    tm = _pick_tm(m)
    mp = _round_up(m, tm)
    pad = mp - m
    xp = jnp.pad(x2d, ((0, pad), (0, 0))) if pad else x2d
    out = pl.pallas_call(
        functools.partial(_ffn_kernel, eps=eps),
        out_shape=jax.ShapeDtypeStruct((mp, d), x2d.dtype),
        grid_spec=pltpu.PrefetchScalarGridSpec(
            num_scalar_prefetch=0,
            grid=(mp // tm,),
            in_specs=[pl.BlockSpec((tm, d), lambda i: (i, 0)),
                      pl.BlockSpec((1, d), lambda i: (0, 0)),
                      pl.BlockSpec((1, d), lambda i: (0, 0)),
                      pl.BlockSpec((d, dff), lambda i: (0, 0)),
                      pl.BlockSpec((1, dff), lambda i: (0, 0)),
                      pl.BlockSpec((dff, d), lambda i: (0, 0)),
                      pl.BlockSpec((1, d), lambda i: (0, 0))],
            out_specs=pl.BlockSpec((tm, d), lambda i: (i, 0))),
        compiler_params=pltpu.CompilerParams(
            dimension_semantics=("parallel",)),
    )(xp, gamma.reshape(1, d), beta.reshape(1, d),
      w1, b1.reshape(1, dff), w2, b2.reshape(1, d))
    return out[:m]


# ---------------------------------------------------------------------------
# full TransformerDecoder forward (Pallas path)
# ---------------------------------------------------------------------------
def decoder_forward(params, tgt_ids, src_ids, memory_bank, *, heads, padding_idx=0):
    b, t = tgt_ids.shape
    s = src_ids.shape[1]
    d = memory_bank.shape[-1]
    dh = d // heads
    scale = 1.0 / math.sqrt(dh)

    # TODO(synk): embedding gather done with jnp.take; everything after is Pallas.
    emb = jnp.take(params["embedding"], tgt_ids, axis=0)            # (B,T,D)
    x = scale_add_posenc(emb, params["pe"])                          # dropout = identity

    # masks (1 = masked)
    causal = jnp.triu(jnp.ones((t, t), jnp.int32), k=1)
    tgt_pad = (tgt_ids == padding_idx).astype(jnp.int32)
    dec_mask = ((tgt_pad[:, None, :] + causal[None, :, :]) > 0).astype(jnp.int32)
    src_pad = (src_ids == padding_idx).astype(jnp.int32)
    src_mask = jnp.broadcast_to(src_pad[:, None, :], (b, t, s)).astype(jnp.int32)

    def to_heads(z, length):
        return z.reshape(b, length, heads, dh).transpose(0, 2, 1, 3)

    def from_heads(z):
        return z.transpose(0, 2, 1, 3).reshape(b * z.shape[2], d)

    mem2d = memory_bank.reshape(b * s, d)
    out2d = x.reshape(b * t, d)
    attns = []
    for lyr in params["layers"]:
        inputs2d = out2d
        # ---- self attention ----
        input_norm = layernorm(inputs2d, lyr["ln1_g"], lyr["ln1_b"])
        qkv = linear(input_norm, lyr["w_qkv"], lyr["b_qkv"])        # fused Q/K/V proj
        q, k, v = jnp.split(qkv, 3, axis=-1)
        ctx, _ = mha_core(to_heads(q, t), to_heads(k, t), to_heads(v, t),
                          dec_mask, scale=scale)
        query = linear(from_heads(ctx), lyr["w_self_out"], lyr["b_self_out"],
                       residual=inputs2d)                            # final_linear + x
        # ---- cross attention ----
        query_norm = layernorm(query, lyr["ln2_g"], lyr["ln2_b"])
        qc = linear(query_norm, lyr["w_cq"], lyr["b_cq"])
        kv = linear(mem2d, lyr["w_ckv"], lyr["b_ckv"])               # fused K/V proj
        kc, vc = jnp.split(kv, 2, axis=-1)
        ctxc, attn = mha_core(to_heads(qc, t), to_heads(kc, s), to_heads(vc, s),
                              src_mask, scale=scale)
        mid_plus_q = linear(from_heads(ctxc), lyr["w_ctx_out"], lyr["b_ctx_out"],
                            residual=query)                          # final_linear + query
        # ---- feed forward (fused LN + MLP + residual) ----
        out2d = ffn(mid_plus_q, lyr["ffn_ln_g"], lyr["ffn_ln_b"],
                    lyr["w1"], lyr["b1"], lyr["w2"], lyr["b2"])
        attns.append(attn)

    out2d = layernorm(out2d, params["lnf_g"], params["lnf_b"])
    return out2d.reshape(b, t, d), jnp.stack(attns)


# ---------------------------------------------------------------------------
# parameter construction (torch-Linear weights stored pre-transposed (in, out))
# ---------------------------------------------------------------------------
def init_params(key, *, vocab, d_model, heads, d_ff, num_layers,
                max_len=512, padding_idx=0):
    del heads
    keys = jax.random.split(key, 2 + num_layers)

    emb = jax.random.normal(keys[0], (vocab, d_model), jnp.float32)
    emb = emb.at[padding_idx].set(0.0)

    position = jnp.arange(max_len, dtype=jnp.float32)[:, None]
    div_term = jnp.exp(jnp.arange(0, d_model, 2, dtype=jnp.float32)
                       * (-math.log(10000.0) / d_model))
    pe = jnp.zeros((max_len, d_model), jnp.float32)
    pe = pe.at[:, 0::2].set(jnp.sin(position * div_term))
    pe = pe.at[:, 1::2].set(jnp.cos(position * div_term))

    def dense(k, fan_in, fan_out):
        kw, kb = jax.random.split(k)
        w = jax.random.normal(kw, (fan_in, fan_out), jnp.float32) / math.sqrt(fan_in)
        bb = 0.02 * jax.random.normal(kb, (fan_out,), jnp.float32)
        return w, bb

    def ln_pair(k):
        k1, k2 = jax.random.split(k)
        g = 1.0 + 0.1 * jax.random.normal(k1, (d_model,), jnp.float32)
        bb = 0.1 * jax.random.normal(k2, (d_model,), jnp.float32)
        return g, bb

    layers = []
    for li in range(num_layers):
        lk = jax.random.split(keys[2 + li], 11)
        w_qkv, b_qkv = dense(lk[0], d_model, 3 * d_model)
        w_so, b_so = dense(lk[1], d_model, d_model)
        w_cq, b_cq = dense(lk[2], d_model, d_model)
        w_ckv, b_ckv = dense(lk[3], d_model, 2 * d_model)
        w_co, b_co = dense(lk[4], d_model, d_model)
        w1, b1 = dense(lk[5], d_model, d_ff)
        w2, b2 = dense(lk[6], d_ff, d_model)
        ln1_g, ln1_b = ln_pair(lk[7])
        ln2_g, ln2_b = ln_pair(lk[8])
        lnf_g, lnf_b = ln_pair(lk[9])
        layers.append(dict(
            ln1_g=ln1_g, ln1_b=ln1_b, ln2_g=ln2_g, ln2_b=ln2_b,
            ffn_ln_g=lnf_g, ffn_ln_b=lnf_b,
            w_qkv=w_qkv, b_qkv=b_qkv, w_self_out=w_so, b_self_out=b_so,
            w_cq=w_cq, b_cq=b_cq, w_ckv=w_ckv, b_ckv=b_ckv,
            w_ctx_out=w_co, b_ctx_out=b_co,
            w1=w1, b1=b1, w2=w2, b2=b2))

    g_f, b_f = (1.0 + 0.1 * jax.random.normal(jax.random.split(keys[1])[0],
                                              (d_model,), jnp.float32),
                0.1 * jax.random.normal(jax.random.split(keys[1])[1],
                                        (d_model,), jnp.float32))
    return dict(embedding=emb, pe=pe, layers=layers, lnf_g=g_f, lnf_b=b_f)


# ---------------------------------------------------------------------------
# pure-JAX reference (mirrors the PyTorch module op-for-op)
# ---------------------------------------------------------------------------
def _ref_ln(x, g, b, eps=1e-6):
    mu = jnp.mean(x, axis=-1, keepdims=True)
    var = jnp.mean((x - mu) ** 2, axis=-1, keepdims=True)
    return (x - mu) / jnp.sqrt(var + eps) * g + b


def reference_forward(params, tgt_ids, src_ids, memory_bank, *, heads, padding_idx=0):
    b, t = tgt_ids.shape
    s = src_ids.shape[1]
    d = memory_bank.shape[-1]
    dh = d // heads

    emb = jnp.take(params["embedding"], tgt_ids, axis=0)
    out = emb * math.sqrt(d) + params["pe"][:t][None]

    causal = jnp.triu(jnp.ones((t, t), jnp.int32), k=1)
    tgt_pad = (tgt_ids == padding_idx).astype(jnp.int32)
    dec_mask = (tgt_pad[:, None, :] + causal[None, :, :]) > 0
    src_mask = jnp.broadcast_to((src_ids == padding_idx)[:, None, :], (b, t, s))

    def split_heads(z):
        return z.reshape(b, z.shape[1], heads, dh).transpose(0, 2, 1, 3)

    def attn_block(qh, kh, vh, mask):
        scores = jnp.einsum("bhqd,bhkd->bhqk", qh / math.sqrt(dh), kh)
        scores = jnp.where(mask[:, None], -1e18, scores)
        a = jax.nn.softmax(scores, axis=-1)
        ctx = jnp.einsum("bhqk,bhkd->bhqd", a, vh)
        return ctx.transpose(0, 2, 1, 3).reshape(b, -1, d), a

    for lyr in params["layers"]:
        inp = out
        innorm = _ref_ln(inp, lyr["ln1_g"], lyr["ln1_b"])
        qkv = innorm @ lyr["w_qkv"] + lyr["b_qkv"]
        q, k, v = jnp.split(qkv, 3, axis=-1)
        ctx, _ = attn_block(split_heads(q), split_heads(k), split_heads(v), dec_mask)
        query = ctx @ lyr["w_self_out"] + lyr["b_self_out"] + inp
        qn = _ref_ln(query, lyr["ln2_g"], lyr["ln2_b"])
        qc = qn @ lyr["w_cq"] + lyr["b_cq"]
        kv = memory_bank @ lyr["w_ckv"] + lyr["b_ckv"]
        kc, vc = jnp.split(kv, 2, axis=-1)
        ctxc, _ = attn_block(split_heads(qc), split_heads(kc), split_heads(vc), src_mask)
        mid = ctxc @ lyr["w_ctx_out"] + lyr["b_ctx_out"] + query
        h = _ref_ln(mid, lyr["ffn_ln_g"], lyr["ffn_ln_b"])
        out = mid + (_gelu_new(h @ lyr["w1"] + lyr["b1"]) @ lyr["w2"] + lyr["b2"])

    return _ref_ln(out, params["lnf_g"], params["lnf_b"])


# ---------------------------------------------------------------------------
if __name__ == "__main__":
    batch, tgt_len, src_len = 2, 8, 16
    d_model, heads, d_ff, num_layers, vocab = 32, 4, 64, 2, 50

    key = jax.random.PRNGKey(0)
    kp, kt, ks, km = jax.random.split(key, 4)
    params = init_params(kp, vocab=vocab, d_model=d_model, heads=heads,
                         d_ff=d_ff, num_layers=num_layers)
    tgt_ids = jax.random.randint(kt, (batch, tgt_len), 1, vocab)
    src_ids = jax.random.randint(ks, (batch, src_len), 1, vocab)
    src_ids = src_ids.at[:, -3:].set(0)        # padded source positions exercise src mask
    memory_bank = jax.random.normal(km, (batch, src_len, d_model), jnp.float32)

    fwd = jax.jit(functools.partial(decoder_forward, heads=heads))
    out, attns = jax.block_until_ready(fwd(params, tgt_ids, src_ids, memory_bank))

    ref = reference_forward(params, tgt_ids, src_ids, memory_bank, heads=heads)

    assert out.shape == (batch, tgt_len, d_model)
    assert attns.shape == (num_layers, batch, heads, tgt_len, src_len)
    max_err = float(jnp.max(jnp.abs(out - ref)))
    assert jnp.allclose(out, ref, atol=3e-2, rtol=3e-2), f"max_err={max_err}"

    print("KERNEL_OK")
</pallas_src>

<mosaic_0001>
module attributes {stable_mosaic.version = 11 : i64} {
  func.func @_layernorm_kernel(%arg0: i32, %arg1: memref<16x32xf32, #tpu.memory_space<vmem>>, %arg2: memref<1x32xf32, #tpu.memory_space<vmem>>, %arg3: memref<1x32xf32, #tpu.memory_space<vmem>>, %arg4: memref<16x32xf32, #tpu.memory_space<vmem>>) attributes {dimension_semantics = [#tpu.dimension_semantics<parallel>], iteration_bounds = array<i64: 1>, scalar_prefetch = 0 : i64, scratch_operands = 0 : i64, tpu.core_type = #tpu.core_type<tc>, window_params = [{transform_indices = @transform_0, window_bounds = array<i64: 16, 32>}, {pipeline_mode = #tpu.pipeline_mode<synchronous>, transform_indices = @transform_1, window_bounds = array<i64: 1, 32>}, {pipeline_mode = #tpu.pipeline_mode<synchronous>, transform_indices = @transform_2, window_bounds = array<i64: 1, 32>}, {transform_indices = @transform_3, window_bounds = array<i64: 16, 32>}]} {
    %c0 = arith.constant 0 : index
    %c0_0 = arith.constant 0 : index
    %0 = vector.load %arg1[%c0, %c0_0] : memref<16x32xf32, #tpu.memory_space<vmem>>, vector<16x32xf32>
    %cst = arith.constant dense<0.000000e+00> : vector<16xf32>
    %1 = vector.multi_reduction <add>, %0, %cst [1] : vector<16x32xf32> to vector<16xf32>
    %2 = vector.shape_cast %1 : vector<16xf32> to vector<16x1xf32>
    %cst_1 = arith.constant 3.200000e+01 : f32
    %3 = vector.broadcast %cst_1 : f32 to vector<16x1xf32>
    %4 = arith.divf %2, %3 : vector<16x1xf32>
    %5 = vector.broadcast %4 : vector<16x1xf32> to vector<16x32xf32>
    %6 = arith.subf %0, %5 : vector<16x32xf32>
    %7 = arith.mulf %6, %6 : vector<16x32xf32>
    %cst_2 = arith.constant dense<0.000000e+00> : vector<16xf32>
    %8 = vector.multi_reduction <add>, %7, %cst_2 [1] : vector<16x32xf32> to vector<16xf32>
    %9 = vector.shape_cast %8 : vector<16xf32> to vector<16x1xf32>
    %cst_3 = arith.constant 3.200000e+01 : f32
    %10 = vector.broadcast %cst_3 : f32 to vector<16x1xf32>
    %11 = arith.divf %9, %10 : vector<16x1xf32>
    %cst_4 = arith.constant 9.99999997E-7 : f32
    %12 = vector.broadcast %cst_4 : f32 to vector<16x1xf32>
    %13 = arith.addf %11, %12 : vector<16x1xf32>
    %14 = math.rsqrt %13 : vector<16x1xf32>
    %15 = vector.broadcast %14 : vector<16x1xf32> to vector<16x32xf32>
    %16 = arith.mulf %6, %15 : vector<16x32xf32>
    %c0_5 = arith.constant 0 : index
    %c0_6 = arith.constant 0 : index
    %17 = vector.load %arg2[%c0_5, %c0_6] : memref<1x32xf32, #tpu.memory_space<vmem>>, vector<1x32xf32>
    %18 = vector.broadcast %17 : vector<1x32xf32> to vector<16x32xf32>
    %19 = arith.mulf %16, %18 : vector<16x32xf32>
    %c0_7 = arith.constant 0 : index
    %c0_8 = arith.constant 0 : index
    %20 = vector.load %arg3[%c0_7, %c0_8] : memref<1x32xf32, #tpu.memory_space<vmem>>, vector<1x32xf32>
    %21 = vector.broadcast %20 : vector<1x32xf32> to vector<16x32xf32>
    %22 = arith.addf %19, %21 : vector<16x32xf32>
    %c0_9 = arith.constant 0 : index
    %c0_10 = arith.constant 0 : index
    %23 = vector.load %arg4[%c0_9, %c0_10] : memref<16x32xf32, #tpu.memory_space<vmem>>, vector<16x32xf32>
    tpu.vector_store %arg4[%c0_9, %c0_10], %22 {strides = array<i32>} : memref<16x32xf32, #tpu.memory_space<vmem>>, vector<16x32xf32>,
    return
  }
  func.func @transform_0(%arg0: i32) -> (i32, i32) {
    %c0_i32 = arith.constant 0 : i32
    %c0_i32_0 = arith.constant 0 : i32
    return %arg0, %c0_i32 : i32, i32
  }
  func.func @transform_1(%arg0: i32) -> (i32, i32) {
    %c0_i32 = arith.constant 0 : i32
    %c0_i32_0 = arith.constant 0 : i32
    %c0_i32_1 = arith.constant 0 : i32
    return %c0_i32, %c0_i32_0 : i32, i32
  }
  func.func @transform_2(%arg0: i32) -> (i32, i32) {
    %c0_i32 = arith.constant 0 : i32
    %c0_i32_0 = arith.constant 0 : i32
    %c0_i32_1 = arith.constant 0 : i32
    return %c0_i32, %c0_i32_0 : i32, i32
  }
  func.func @transform_3(%arg0: i32) -> (i32, i32) {
    %c0_i32 = arith.constant 0 : i32
    %c0_i32_0 = arith.constant 0 : i32
    return %arg0, %c0_i32 : i32, i32
  }
}

module attributes {stable_mosaic.version = 11 : i64} {
  func.func @_scale_posenc_kernel(%arg0: i32, %arg1: memref<1x8x32xf32, #tpu.memory_space<vmem>>, %arg2: memref<8x32xf32, #tpu.memory_space<vmem>>, %arg3: memref<1x8x32xf32, #tpu.memory_space<vmem>>) attributes {dimension_semantics = [#tpu.dimension_semantics<parallel>], iteration_bounds = array<i64: 2>, scalar_prefetch = 0 : i64, scratch_operands = 0 : i64, tpu.core_type = #tpu.core_type<tc>, window_params = [{transform_indices = @transform_0, window_bounds = array<i64: 1, 8, 32>}, {pipeline_mode = #tpu.pipeline_mode<synchronous>, transform_indices = @transform_1, window_bounds = array<i64: 8, 32>}, {transform_indices = @transform_2, window_bounds = array<i64: 1, 8, 32>}]} {
    %c0 = arith.constant 0 : index
    %c0_0 = arith.constant 0 : index
    %c0_1 = arith.constant 0 : index
    %0 = vector.load %arg1[%c0, %c0_0, %c0_1] : memref<1x8x32xf32, #tpu.memory_space<vmem>>, vector<1x8x32xf32>
    %1 = vector.shape_cast %0 : vector<1x8x32xf32> to vector<8x32xf32>
    %cst = arith.constant 5.65685415 : f32
    %2 = vector.broadcast %cst : f32 to vector<8x32xf32>
    %3 = arith.mulf %1, %2 : vector<8x32xf32>
    %c0_2 = arith.constant 0 : index
    %c0_3 = arith.constant 0 : index
    %4 = vector.load %arg2[%c0_2, %c0_3] : memref<8x32xf32, #tpu.memory_space<vmem>>, vector<8x32xf32>
    %5 = arith.addf %3, %4 : vector<8x32xf32>
    %c0_4 = arith.constant 0 : index
    %c0_5 = arith.constant 0 : index
    %c0_6 = arith.constant 0 : index
    %6 = vector.load %arg3[%c0_4, %c0_5, %c0_6] : memref<1x8x32xf32, #tpu.memory_space<vmem>>, vector<1x8x32xf32>
    %7 = vector.shape_cast %6 : vector<1x8x32xf32> to vector<8x32xf32>
    %8 = vector.shape_cast %5 : vector<8x32xf32> to vector<1x8x32xf32>
    tpu.vector_store %arg3[%c0_4, %c0_5, %c0_6], %8 {strides = array<i32>} : memref<1x8x32xf32, #tpu.memory_space<vmem>>, vector<1x8x32xf32>,
    return
  }
  func.func @transform_0(%arg0: i32) -> (i32, i32, i32) {
    %c0_i32 = arith.constant 0 : i32
    %c0_i32_0 = arith.constant 0 : i32
    %c0_i32_1 = arith.constant 0 : i32
    return %arg0, %c0_i32, %c0_i32_0 : i32, i32, i32
  }
  func.func @transform_1(%arg0: i32) -> (i32, i32) {
    %c0_i32 = arith.constant 0 : i32
    %c0_i32_0 = arith.constant 0 : i32
    %c0_i32_1 = arith.constant 0 : i32
    return %c0_i32, %c0_i32_0 : i32, i32
  }
  func.func @transform_2(%arg0: i32) -> (i32, i32, i32) {
    %c0_i32 = arith.constant 0 : i32
    %c0_i32_0 = arith.constant 0 : i32
    %c0_i32_1 = arith.constant 0 : i32
    return %arg0, %c0_i32, %c0_i32_0 : i32, i32, i32
  }
}

module attributes {stable_mosaic.version = 11 : i64} {
  func.func @_linear_kernel(%arg0: i32, %arg1: memref<16x32xf32, #tpu.memory_space<vmem>>, %arg2: memref<32x96xf32, #tpu.memory_space<vmem>>, %arg3: memref<1x96xf32, #tpu.memory_space<vmem>>, %arg4: memref<16x96xf32, #tpu.memory_space<vmem>>) attributes {dimension_semantics = [#tpu.dimension_semantics<parallel>], iteration_bounds = array<i64: 1>, scalar_prefetch = 0 : i64, scratch_operands = 0 : i64, tpu.core_type = #tpu.core_type<tc>, window_params = [{transform_indices = @transform_0, window_bounds = array<i64: 16, 32>}, {pipeline_mode = #tpu.pipeline_mode<synchronous>, transform_indices = @transform_1, window_bounds = array<i64: 32, 96>}, {pipeline_mode = #tpu.pipeline_mode<synchronous>, transform_indices = @transform_2, window_bounds = array<i64: 1, 96>}, {transform_indices = @transform_3, window_bounds = array<i64: 16, 96>}]} {
    %c0 = arith.constant 0 : index
    %c0_0 = arith.constant 0 : index
    %0 = vector.load %arg1[%c0, %c0_0] : memref<16x32xf32, #tpu.memory_space<vmem>>, vector<16x32xf32>
    %c0_1 = arith.constant 0 : index
    %c0_2 = arith.constant 0 : index
    %1 = vector.load %arg2[%c0_1, %c0_2] : memref<32x96xf32, #tpu.memory_space<vmem>>, vector<32x96xf32>
    %cst = arith.constant dense<0.000000e+00> : vector<16x96xf32>
    %2 = tpu.matmul %0, %1, %cst {dimension_numbers = #tpu.dot_dimension_numbers<[1], [0], [0], [1], [0, 0, 1, 1], [], []>} : vector<16x32xf32>, vector<32x96xf32>, vector<16x96xf32> -> vector<16x96xf32>
    %c0_3 = arith.constant 0 : index
    %c0_4 = arith.constant 0 : index
    %3 = vector.load %arg3[%c0_3, %c0_4] : memref<1x96xf32, #tpu.memory_space<vmem>>, vector<1x96xf32>
    %4 = vector.broadcast %3 : vector<1x96xf32> to vector<16x96xf32>
    %5 = arith.addf %2, %4 : vector<16x96xf32>
    %c0_5 = arith.constant 0 : index
    %c0_6 = arith.constant 0 : index
    %6 = vector.load %arg4[%c0_5, %c0_6] : memref<16x96xf32, #tpu.memory_space<vmem>>, vector<16x96xf32>
    tpu.vector_store %arg4[%c0_5, %c0_6], %5 {strides = array<i32>} : memref<16x96xf32, #tpu.memory_space<vmem>>, vector<16x96xf32>,
    return
  }
  func.func @transform_0(%arg0: i32) -> (i32, i32) {
    %c0_i32 = arith.constant 0 : i32
    %c0_i32_0 = arith.constant 0 : i32
    return %arg0, %c0_i32 : i32, i32
  }
  func.func @transform_1(%arg0: i32) -> (i32, i32) {
    %c0_i32 = arith.constant 0 : i32
    %c0_i32_0 = arith.constant 0 : i32
    %c0_i32_1 = arith.constant 0 : i32
    return %c0_i32, %c0_i32_0 : i32, i32
  }
  func.func @transform_2(%arg0: i32) -> (i32, i32) {
    %c0_i32 = arith.constant 0 : i32
    %c0_i32_0 = arith.constant 0 : i32
    %c0_i32_1 = arith.constant 0 : i32
    return %c0_i32, %c0_i32_0 : i32, i32
  }
  func.func @transform_3(%arg0: i32) -> (i32, i32) {
    %c0_i32 = arith.constant 0 : i32
    %c0_i32_0 = arith.constant 0 : i32
    return %arg0, %c0_i32 : i32, i32
  }
}

module attributes {stable_mosaic.version = 11 : i64} {
  func.func @_mha_core_kernel(%arg0: i32, %arg1: i32, %arg2: memref<1x1x8x8xf32, #tpu.memory_space<vmem>>, %arg3: memref<1x1x8x8xf32, #tpu.memory_space<vmem>>, %arg4: memref<1x1x8x8xf32, #tpu.memory_space<vmem>>, %arg5: memref<1x8x8xi32, #tpu.memory_space<vmem>>, %arg6: memref<1x1x8x8xf32, #tpu.memory_space<vmem>>, %arg7: memref<1x1x8x8xf32, #tpu.memory_space<vmem>>) attributes {dimension_semantics = [#tpu.dimension_semantics<parallel>, #tpu.dimension_semantics<parallel>], iteration_bounds = array<i64: 2, 4>, scalar_prefetch = 0 : i64, scratch_operands = 0 : i64, tpu.core_type = #tpu.core_type<tc>, window_params = [{transform_indices = @transform_0, window_bounds = array<i64: 1, 1, 8, 8>}, {transform_indices = @transform_1, window_bounds = array<i64: 1, 1, 8, 8>}, {transform_indices = @transform_2, window_bounds = array<i64: 1, 1, 8, 8>}, {transform_indices = @transform_3, window_bounds = array<i64: 1, 8, 8>}, {transform_indices = @transform_4, window_bounds = array<i64: 1, 1, 8, 8>}, {transform_indices = @transform_5, window_bounds = array<i64: 1, 1, 8, 8>}]} {
    %c0 = arith.constant 0 : index
    %c0_0 = arith.constant 0 : index
    %c0_1 = arith.constant 0 : index
    %c0_2 = arith.constant 0 : index
    %0 = vector.load %arg2[%c0, %c0_0, %c0_1, %c0_2] : memref<1x1x8x8xf32, #tpu.memory_space<vmem>>, vector<1x1x8x8xf32>
    %1 = vector.shape_cast %0 : vector<1x1x8x8xf32> to vector<8x8xf32>
    %cst = arith.constant 0.353553385 : f32
    %2 = vector.broadcast %cst : f32 to vector<8x8xf32>
    %3 = arith.mulf %1, %2 : vector<8x8xf32>
    %c0_3 = arith.constant 0 : index
    %c0_4 = arith.constant 0 : index
    %c0_5 = arith.constant 0 : index
    %c0_6 = arith.constant 0 : index
    %4 = vector.load %arg3[%c0_3, %c0_4, %c0_5, %c0_6] : memref<1x1x8x8xf32, #tpu.memory_space<vmem>>, vector<1x1x8x8xf32>
    %5 = vector.shape_cast %4 : vector<1x1x8x8xf32> to vector<8x8xf32>
    %c0_7 = arith.constant 0 : index
    %c0_8 = arith.constant 0 : index
    %c0_9 = arith.constant 0 : index
    %c0_10 = arith.constant 0 : index
    %6 = vector.load %arg4[%c0_7, %c0_8, %c0_9, %c0_10] : memref<1x1x8x8xf32, #tpu.memory_space<vmem>>, vector<1x1x8x8xf32>
    %7 = vector.shape_cast %6 : vector<1x1x8x8xf32> to vector<8x8xf32>
    %8 = tpu.transpose %5, [1, 0] : vector<8x8xf32> -> vector<8x8xf32>
    %cst_11 = arith.constant dense<0.000000e+00> : vector<8x8xf32>
    %9 = tpu.matmul %3, %8, %cst_11 {dimension_numbers = #tpu.dot_dimension_numbers<[1], [0], [0], [1], [0, 0, 1, 1], [], []>} : vector<8x8xf32>, vector<8x8xf32>, vector<8x8xf32> -> vector<8x8xf32>
    %c0_12 = arith.constant 0 : index
    %c0_13 = arith.constant 0 : index
    %c0_14 = arith.constant 0 : index
    %10 = vector.load %arg5[%c0_12, %c0_13, %c0_14] : memref<1x8x8xi32, #tpu.memory_space<vmem>>, vector<1x8x8xi32>
    %11 = vector.shape_cast %10 : vector<1x8x8xi32> to vector<8x8xi32>
    %c0_i32 = arith.constant 0 : i32
    %12 = vector.broadcast %c0_i32 : i32 to vector<8x8xi32>
    %13 = arith.cmpi ne, %11, %12 : vector<8x8xi32>
    %cst_15 = arith.constant -9.99999984E+17 : f32
    %14 = vector.broadcast %cst_15 : f32 to vector<8x8xf32>
    %15 = arith.select %13, %14, %9 : vector<8x8xi1>, vector<8x8xf32>
    %cst_16 = arith.constant dense<0xFF800000> : vector<8xf32>
    %16 = vector.multi_reduction <maximumf>, %15, %cst_16 [1] : vector<8x8xf32> to vector<8xf32>
    %17 = vector.shape_cast %16 : vector<8xf32> to vector<8x1xf32>
    %18 = vector.broadcast %17 : vector<8x1xf32> to vector<8x8xf32>
    %19 = arith.subf %15, %18 : vector<8x8xf32>
    %20 = math.exp %19 : vector<8x8xf32>
    %cst_17 = arith.constant dense<0.000000e+00> : vector<8xf32>
    %21 = vector.multi_reduction <add>, %20, %cst_17 [1] : vector<8x8xf32> to vector<8xf32>
    %22 = vector.shape_cast %21 : vector<8xf32> to vector<8x1xf32>
    %23 = vector.broadcast %22 : vector<8x1xf32> to vector<8x8xf32>
    %24 = arith.divf %20, %23 : vector<8x8xf32>
    %c0_18 = arith.constant 0 : index
    %c0_19 = arith.constant 0 : index
    %c0_20 = arith.constant 0 : index
    %c0_21 = arith.constant 0 : index
    %25 = vector.load %arg7[%c0_18, %c0_19, %c0_20, %c0_21] : memref<1x1x8x8xf32, #tpu.memory_space<vmem>>, vector<1x1x8x8xf32>
    %26 = vector.shape_cast %25 : vector<1x1x8x8xf32> to vector<8x8xf32>
    %27 = vector.shape_cast %24 : vector<8x8xf32> to vector<1x1x8x8xf32>
    tpu.vector_store %arg7[%c0_18, %c0_19, %c0_20, %c0_21], %27 {strides = array<i32>} : memref<1x1x8x8xf32, #tpu.memory_space<vmem>>, vector<1x1x8x8xf32>,
    %cst_22 = arith.constant dense<0.000000e+00> : vector<8x8xf32>
    %28 = tpu.matmul %24, %7, %cst_22 {dimension_numbers = #tpu.dot_dimension_numbers<[1], [0], [0], [1], [0, 0, 1, 1], [], []>} : vector<8x8xf32>, vector<8x8xf32>, vector<8x8xf32> -> vector<8x8xf32>
    %c0_23 = arith.constant 0 : index
    %c0_24 = arith.constant 0 : index
    %c0_25 = arith.constant 0 : index
    %c0_26 = arith.constant 0 : index
    %29 = vector.load %arg6[%c0_23, %c0_24, %c0_25, %c0_26] : memref<1x1x8x8xf32, #tpu.memory_space<vmem>>, vector<1x1x8x8xf32>
    %30 = vector.shape_cast %29 : vector<1x1x8x8xf32> to vector<8x8xf32>
    %31 = vector.shape_cast %28 : vector<8x8xf32> to vector<1x1x8x8xf32>
    tpu.vector_store %arg6[%c0_23, %c0_24, %c0_25, %c0_26], %31 {strides = array<i32>} : memref<1x1x8x8xf32, #tpu.memory_space<vmem>>, vector<1x1x8x8xf32>,
    return
  }
  func.func @transform_0(%arg0: i32, %arg1: i32) -> (i32, i32, i32, i32) {
    %c0_i32 = arith.constant 0 : i32
    %c0_i32_0 = arith.constant 0 : i32
    %c0_i32_1 = arith.constant 0 : i32
    return %arg0, %arg1, %c0_i32, %c0_i32_0 : i32, i32, i32, i32
  }
  func.func @transform_1(%arg0: i32, %arg1: i32) -> (i32, i32, i32, i32) {
    %c0_i32 = arith.constant 0 : i32
    %c0_i32_0 = arith.constant 0 : i32
    %c0_i32_1 = arith.constant 0 : i32
    return %arg0, %arg1, %c0_i32, %c0_i32_0 : i32, i32, i32, i32
  }
  func.func @transform_2(%arg0: i32, %arg1: i32) -> (i32, i32, i32, i32) {
    %c0_i32 = arith.constant 0 : i32
    %c0_i32_0 = arith.constant 0 : i32
    %c0_i32_1 = arith.constant 0 : i32
    return %arg0, %arg1, %c0_i32, %c0_i32_0 : i32, i32, i32, i32
  }
  func.func @transform_3(%arg0: i32, %arg1: i32) -> (i32, i32, i32) {
    %c0_i32 = arith.constant 0 : i32
    %c0_i32_0 = arith.constant 0 : i32
    %c0_i32_1 = arith.constant 0 : i32
    return %arg0, %c0_i32, %c0_i32_0 : i32, i32, i32
  }
  func.func @transform_4(%arg0: i32, %arg1: i32) -> (i32, i32, i32, i32) {
    %c0_i32 = arith.constant 0 : i32
    %c0_i32_0 = arith.constant 0 : i32
    %c0_i32_1 = arith.constant 0 : i32
    return %arg0, %arg1, %c0_i32, %c0_i32_0 : i32, i32, i32, i32
  }
  func.func @transform_5(%arg0: i32, %arg1: i32) -> (i32, i32, i32, i32) {
    %c0_i32 = arith.constant 0 : i32
    %c0_i32_0 = arith.constant 0 : i32
    %c0_i32_1 = arith.constant 0 : i32
    return %arg0, %arg1, %c0_i32, %c0_i32_0 : i32, i32, i32, i32
  }
}

module attributes {stable_mosaic.version = 11 : i64} {
  func.func @_linear_kernel(%arg0: i32, %arg1: memref<32x32xf32, #tpu.memory_space<vmem>>, %arg2: memref<32x64xf32, #tpu.memory_space<vmem>>, %arg3: memref<1x64xf32, #tpu.memory_space<vmem>>, %arg4: memref<32x64xf32, #tpu.memory_space<vmem>>) attributes {dimension_semantics = [#tpu.dimension_semantics<parallel>], iteration_bounds = array<i64: 1>, scalar_prefetch = 0 : i64, scratch_operands = 0 : i64, tpu.core_type = #tpu.core_type<tc>, window_params = [{transform_indices = @transform_0, window_bounds = array<i64: 32, 32>}, {pipeline_mode = #tpu.pipeline_mode<synchronous>, transform_indices = @transform_1, window_bounds = array<i64: 32, 64>}, {pipeline_mode = #tpu.pipeline_mode<synchronous>, transform_indices = @transform_2, window_bounds = array<i64: 1, 64>}, {transform_indices = @transform_3, window_bounds = array<i64: 32, 64>}]} {
    %c0 = arith.constant 0 : index
    %c0_0 = arith.constant 0 : index
    %0 = vector.load %arg1[%c0, %c0_0] : memref<32x32xf32, #tpu.memory_space<vmem>>, vector<32x32xf32>
    %c0_1 = arith.constant 0 : index
    %c0_2 = arith.constant 0 : index
    %1 = vector.load %arg2[%c0_1, %c0_2] : memref<32x64xf32, #tpu.memory_space<vmem>>, vector<32x64xf32>
    %cst = arith.constant dense<0.000000e+00> : vector<32x64xf32>
    %2 = tpu.matmul %0, %1, %cst {dimension_numbers = #tpu.dot_dimension_numbers<[1], [0], [0], [1], [0, 0, 1, 1], [], []>} : vector<32x32xf32>, vector<32x64xf32>, vector<32x64xf32> -> vector<32x64xf32>
    %c0_3 = arith.constant 0 : index
    %c0_4 = arith.constant 0 : index
    %3 = vector.load %arg3[%c0_3, %c0_4] : memref<1x64xf32, #tpu.memory_space<vmem>>, vector<1x64xf32>
    %4 = vector.broadcast %3 : vector<1x64xf32> to vector<32x64xf32>
    %5 = arith.addf %2, %4 : vector<32x64xf32>
    %c0_5 = arith.constant 0 : index
    %c0_6 = arith.constant 0 : index
    %6 = vector.load %arg4[%c0_5, %c0_6] : memref<32x64xf32, #tpu.memory_space<vmem>>, vector<32x64xf32>
    tpu.vector_store %arg4[%c0_5, %c0_6], %5 {strides = array<i32>} : memref<32x64xf32, #tpu.memory_space<vmem>>, vector<32x64xf32>,
    return
  }
  func.func @transform_0(%arg0: i32) -> (i32, i32) {
    %c0_i32 = arith.constant 0 : i32
    %c0_i32_0 = arith.constant 0 : i32
    return %arg0, %c0_i32 : i32, i32
  }
  func.func @transform_1(%arg0: i32) -> (i32, i32) {
    %c0_i32 = arith.constant 0 : i32
    %c0_i32_0 = arith.constant 0 : i32
    %c0_i32_1 = arith.constant 0 : i32
    return %c0_i32, %c0_i32_0 : i32, i32
  }
  func.func @transform_2(%arg0: i32) -> (i32, i32) {
    %c0_i32 = arith.constant 0 : i32
    %c0_i32_0 = arith.constant 0 : i32
    %c0_i32_1 = arith.constant 0 : i32
    return %c0_i32, %c0_i32_0 : i32, i32
  }
  func.func @transform_3(%arg0: i32) -> (i32, i32) {
    %c0_i32 = arith.constant 0 : i32
    %c0_i32_0 = arith.constant 0 : i32
    return %arg0, %c0_i32 : i32, i32
  }
}

module attributes {stable_mosaic.version = 11 : i64} {
  func.func @_linear_kernel(%arg0: i32, %arg1: memref<16x32xf32, #tpu.memory_space<vmem>>, %arg2: memref<32x32xf32, #tpu.memory_space<vmem>>, %arg3: memref<1x32xf32, #tpu.memory_space<vmem>>, %arg4: memref<16x32xf32, #tpu.memory_space<vmem>>) attributes {dimension_semantics = [#tpu.dimension_semantics<parallel>], iteration_bounds = array<i64: 1>, scalar_prefetch = 0 : i64, scratch_operands = 0 : i64, tpu.core_type = #tpu.core_type<tc>, window_params = [{transform_indices = @transform_0, window_bounds = array<i64: 16, 32>}, {pipeline_mode = #tpu.pipeline_mode<synchronous>, transform_indices = @transform_1, window_bounds = array<i64: 32, 32>}, {pipeline_mode = #tpu.pipeline_mode<synchronous>, transform_indices = @transform_2, window_bounds = array<i64: 1, 32>}, {transform_indices = @transform_3, window_bounds = array<i64: 16, 32>}]} {
    %c0 = arith.constant 0 : index
    %c0_0 = arith.constant 0 : index
    %0 = vector.load %arg1[%c0, %c0_0] : memref<16x32xf32, #tpu.memory_space<vmem>>, vector<16x32xf32>
    %c0_1 = arith.constant 0 : index
    %c0_2 = arith.constant 0 : index
    %1 = vector.load %arg2[%c0_1, %c0_2] : memref<32x32xf32, #tpu.memory_space<vmem>>, vector<32x32xf32>
    %cst = arith.constant dense<0.000000e+00> : vector<16x32xf32>
    %2 = tpu.matmul %0, %1, %cst {dimension_numbers = #tpu.dot_dimension_numbers<[1], [0], [0], [1], [0, 0, 1, 1], [], []>} : vector<16x32xf32>, vector<32x32xf32>, vector<16x32xf32> -> vector<16x32xf32>
    %c0_3 = arith.constant 0 : index
    %c0_4 = arith.constant 0 : index
    %3 = vector.load %arg3[%c0_3, %c0_4] : memref<1x32xf32, #tpu.memory_space<vmem>>, vector<1x32xf32>
    %4 = vector.broadcast %3 : vector<1x32xf32> to vector<16x32xf32>
    %5 = arith.addf %2, %4 : vector<16x32xf32>
    %c0_5 = arith.constant 0 : index
    %c0_6 = arith.constant 0 : index
    %6 = vector.load %arg4[%c0_5, %c0_6] : memref<16x32xf32, #tpu.memory_space<vmem>>, vector<16x32xf32>
    tpu.vector_store %arg4[%c0_5, %c0_6], %5 {strides = array<i32>} : memref<16x32xf32, #tpu.memory_space<vmem>>, vector<16x32xf32>,
    return
  }
  func.func @transform_0(%arg0: i32) -> (i32, i32) {
    %c0_i32 = arith.constant 0 : i32
    %c0_i32_0 = arith.constant 0 : i32
    return %arg0, %c0_i32 : i32, i32
  }
  func.func @transform_1(%arg0: i32) -> (i32, i32) {
    %c0_i32 = arith.constant 0 : i32
    %c0_i32_0 = arith.constant 0 : i32
    %c0_i32_1 = arith.constant 0 : i32
    return %c0_i32, %c0_i32_0 : i32, i32
  }
  func.func @transform_2(%arg0: i32) -> (i32, i32) {
    %c0_i32 = arith.constant 0 : i32
    %c0_i32_0 = arith.constant 0 : i32
    %c0_i32_1 = arith.constant 0 : i32
    return %c0_i32, %c0_i32_0 : i32, i32
  }
  func.func @transform_3(%arg0: i32) -> (i32, i32) {
    %c0_i32 = arith.constant 0 : i32
    %c0_i32_0 = arith.constant 0 : i32
    return %arg0, %c0_i32 : i32, i32
  }
}

module attributes {stable_mosaic.version = 11 : i64} {
  func.func @_linear_kernel(%arg0: i32, %arg1: memref<16x32xf32, #tpu.memory_space<vmem>>, %arg2: memref<32x32xf32, #tpu.memory_space<vmem>>, %arg3: memref<1x32xf32, #tpu.memory_space<vmem>>, %arg4: memref<16x32xf32, #tpu.memory_space<vmem>>, %arg5: memref<16x32xf32, #tpu.memory_space<vmem>>) attributes {dimension_semantics = [#tpu.dimension_semantics<parallel>], iteration_bounds = array<i64: 1>, scalar_prefetch = 0 : i64, scratch_operands = 0 : i64, tpu.core_type = #tpu.core_type<tc>, window_params = [{transform_indices = @transform_0, window_bounds = array<i64: 16, 32>}, {pipeline_mode = #tpu.pipeline_mode<synchronous>, transform_indices = @transform_1, window_bounds = array<i64: 32, 32>}, {pipeline_mode = #tpu.pipeline_mode<synchronous>, transform_indices = @transform_2, window_bounds = array<i64: 1, 32>}, {transform_indices = @transform_3, window_bounds = array<i64: 16, 32>}, {transform_indices = @transform_4, window_bounds = array<i64: 16, 32>}]} {
    %c0 = arith.constant 0 : index
    %c0_0 = arith.constant 0 : index
    %0 = vector.load %arg1[%c0, %c0_0] : memref<16x32xf32, #tpu.memory_space<vmem>>, vector<16x32xf32>
    %c0_1 = arith.constant 0 : index
    %c0_2 = arith.constant 0 : index
    %1 = vector.load %arg2[%c0_1, %c0_2] : memref<32x32xf32, #tpu.memory_space<vmem>>, vector<32x32xf32>
    %cst = arith.constant dense<0.000000e+00> : vector<16x32xf32>
    %2 = tpu.matmul %0, %1, %cst {dimension_numbers = #tpu.dot_dimension_numbers<[1], [0], [0], [1], [0, 0, 1, 1], [], []>} : vector<16x32xf32>, vector<32x32xf32>, vector<16x32xf32> -> vector<16x32xf32>
    %c0_3 = arith.constant 0 : index
    %c0_4 = arith.constant 0 : index
    %3 = vector.load %arg3[%c0_3, %c0_4] : memref<1x32xf32, #tpu.memory_space<vmem>>, vector<1x32xf32>
    %4 = vector.broadcast %3 : vector<1x32xf32> to vector<16x32xf32>
    %5 = arith.addf %2, %4 : vector<16x32xf32>
    %c0_5 = arith.constant 0 : index
    %c0_6 = arith.constant 0 : index
    %6 = vector.load %arg4[%c0_5, %c0_6] : memref<16x32xf32, #tpu.memory_space<vmem>>, vector<16x32xf32>
    %7 = arith.addf %5, %6 : vector<16x32xf32>
    %c0_7 = arith.constant 0 : index
    %c0_8 = arith.constant 0 : index
    %8 = vector.load %arg5[%c0_7, %c0_8] : memref<16x32xf32, #tpu.memory_space<vmem>>, vector<16x32xf32>
    tpu.vector_store %arg5[%c0_7, %c0_8], %7 {strides = array<i32>} : memref<16x32xf32, #tpu.memory_space<vmem>>, vector<16x32xf32>,
    return
  }
  func.func @transform_0(%arg0: i32) -> (i32, i32) {
    %c0_i32 = arith.constant 0 : i32
    %c0_i32_0 = arith.constant 0 : i32
    return %arg0, %c0_i32 : i32, i32
  }
  func.func @transform_1(%arg0: i32) -> (i32, i32) {
    %c0_i32 = arith.constant 0 : i32
    %c0_i32_0 = arith.constant 0 : i32
    %c0_i32_1 = arith.constant 0 : i32
    return %c0_i32, %c0_i32_0 : i32, i32
  }
  func.func @transform_2(%arg0: i32) -> (i32, i32) {
    %c0_i32 = arith.constant 0 : i32
    %c0_i32_0 = arith.constant 0 : i32
    %c0_i32_1 = arith.constant 0 : i32
    return %c0_i32, %c0_i32_0 : i32, i32
  }
  func.func @transform_3(%arg0: i32) -> (i32, i32) {
    %c0_i32 = arith.constant 0 : i32
    %c0_i32_0 = arith.constant 0 : i32
    return %arg0, %c0_i32 : i32, i32
  }
  func.func @transform_4(%arg0: i32) -> (i32, i32) {
    %c0_i32 = arith.constant 0 : i32
    %c0_i32_0 = arith.constant 0 : i32
    return %arg0, %c0_i32 : i32, i32
  }
}

module attributes {stable_mosaic.version = 11 : i64} {
  func.func @_mha_core_kernel(%arg0: i32, %arg1: i32, %arg2: memref<1x1x8x8xf32, #tpu.memory_space<vmem>>, %arg3: memref<1x1x16x8xf32, #tpu.memory_space<vmem>>, %arg4: memref<1x1x16x8xf32, #tpu.memory_space<vmem>>, %arg5: memref<1x8x16xi32, #tpu.memory_space<vmem>>, %arg6: memref<1x1x8x8xf32, #tpu.memory_space<vmem>>, %arg7: memref<1x1x8x16xf32, #tpu.memory_space<vmem>>) attributes {dimension_semantics = [#tpu.dimension_semantics<parallel>, #tpu.dimension_semantics<parallel>], iteration_bounds = array<i64: 2, 4>, scalar_prefetch = 0 : i64, scratch_operands = 0 : i64, tpu.core_type = #tpu.core_type<tc>, window_params = [{transform_indices = @transform_0, window_bounds = array<i64: 1, 1, 8, 8>}, {transform_indices = @transform_1, window_bounds = array<i64: 1, 1, 16, 8>}, {transform_indices = @transform_2, window_bounds = array<i64: 1, 1, 16, 8>}, {transform_indices = @transform_3, window_bounds = array<i64: 1, 8, 16>}, {transform_indices = @transform_4, window_bounds = array<i64: 1, 1, 8, 8>}, {transform_indices = @transform_5, window_bounds = array<i64: 1, 1, 8, 16>}]} {
    %c0 = arith.constant 0 : index
    %c0_0 = arith.constant 0 : index
    %c0_1 = arith.constant 0 : index
    %c0_2 = arith.constant 0 : index
    %0 = vector.load %arg2[%c0, %c0_0, %c0_1, %c0_2] : memref<1x1x8x8xf32, #tpu.memory_space<vmem>>, vector<1x1x8x8xf32>
    %1 = vector.shape_cast %0 : vector<1x1x8x8xf32> to vector<8x8xf32>
    %cst = arith.constant 0.353553385 : f32
    %2 = vector.broadcast %cst : f32 to vector<8x8xf32>
    %3 = arith.mulf %1, %2 : vector<8x8xf32>
    %c0_3 = arith.constant 0 : index
    %c0_4 = arith.constant 0 : index
    %c0_5 = arith.constant 0 : index
    %c0_6 = arith.constant 0 : index
    %4 = vector.load %arg3[%c0_3, %c0_4, %c0_5, %c0_6] : memref<1x1x16x8xf32, #tpu.memory_space<vmem>>, vector<1x1x16x8xf32>
    %5 = vector.shape_cast %4 : vector<1x1x16x8xf32> to vector<16x8xf32>
    %c0_7 = arith.constant 0 : index
    %c0_8 = arith.constant 0 : index
    %c0_9 = arith.constant 0 : index
    %c0_10 = arith.constant 0 : index
    %6 = vector.load %arg4[%c0_7, %c0_8, %c0_9, %c0_10] : memref<1x1x16x8xf32, #tpu.memory_space<vmem>>, vector<1x1x16x8xf32>
    %7 = vector.shape_cast %6 : vector<1x1x16x8xf32> to vector<16x8xf32>
    %8 = tpu.transpose %5, [1, 0] : vector<16x8xf32> -> vector<8x16xf32>
    %cst_11 = arith.constant dense<0.000000e+00> : vector<8x16xf32>
    %9 = tpu.matmul %3, %8, %cst_11 {dimension_numbers = #tpu.dot_dimension_numbers<[1], [0], [0], [1], [0, 0, 1, 1], [], []>} : vector<8x8xf32>, vector<8x16xf32>, vector<8x16xf32> -> vector<8x16xf32>
    %c0_12 = arith.constant 0 : index
    %c0_13 = arith.constant 0 : index
    %c0_14 = arith.constant 0 : index
    %10 = vector.load %arg5[%c0_12, %c0_13, %c0_14] : memref<1x8x16xi32, #tpu.memory_space<vmem>>, vector<1x8x16xi32>
    %11 = vector.shape_cast %10 : vector<1x8x16xi32> to vector<8x16xi32>
    %c0_i32 = arith.constant 0 : i32
    %12 = vector.broadcast %c0_i32 : i32 to vector<8x16xi32>
    %13 = arith.cmpi ne, %11, %12 : vector<8x16xi32>
    %cst_15 = arith.constant -9.99999984E+17 : f32
    %14 = vector.broadcast %cst_15 : f32 to vector<8x16xf32>
    %15 = arith.select %13, %14, %9 : vector<8x16xi1>, vector<8x16xf32>
    %cst_16 = arith.constant dense<0xFF800000> : vector<8xf32>
    %16 = vector.multi_reduction <maximumf>, %15, %cst_16 [1] : vector<8x16xf32> to vector<8xf32>
    %17 = vector.shape_cast %16 : vector<8xf32> to vector<8x1xf32>
    %18 = vector.broadcast %17 : vector<8x1xf32> to vector<8x16xf32>
    %19 = arith.subf %15, %18 : vector<8x16xf32>
    %20 = math.exp %19 : vector<8x16xf32>
    %cst_17 = arith.constant dense<0.000000e+00> : vector<8xf32>
    %21 = vector.multi_reduction <add>, %20, %cst_17 [1] : vector<8x16xf32> to vector<8xf32>
    %22 = vector.shape_cast %21 : vector<8xf32> to vector<8x1xf32>
    %23 = vector.broadcast %22 : vector<8x1xf32> to vector<8x16xf32>
    %24 = arith.divf %20, %23 : vector<8x16xf32>
    %c0_18 = arith.constant 0 : index
    %c0_19 = arith.constant 0 : index
    %c0_20 = arith.constant 0 : index
    %c0_21 = arith.constant 0 : index
    %25 = vector.load %arg7[%c0_18, %c0_19, %c0_20, %c0_21] : memref<1x1x8x16xf32, #tpu.memory_space<vmem>>, vector<1x1x8x16xf32>
    %26 = vector.shape_cast %25 : vector<1x1x8x16xf32> to vector<8x16xf32>
    %27 = vector.shape_cast %24 : vector<8x16xf32> to vector<1x1x8x16xf32>
    tpu.vector_store %arg7[%c0_18, %c0_19, %c0_20, %c0_21], %27 {strides = array<i32>} : memref<1x1x8x16xf32, #tpu.memory_space<vmem>>, vector<1x1x8x16xf32>,
    %cst_22 = arith.constant dense<0.000000e+00> : vector<8x8xf32>
    %28 = tpu.matmul %24, %7, %cst_22 {dimension_numbers = #tpu.dot_dimension_numbers<[1], [0], [0], [1], [0, 0, 1, 1], [], []>} : vector<8x16xf32>, vector<16x8xf32>, vector<8x8xf32> -> vector<8x8xf32>
    %c0_23 = arith.constant 0 : index
    %c0_24 = arith.constant 0 : index
    %c0_25 = arith.constant 0 : index
    %c0_26 = arith.constant 0 : index
    %29 = vector.load %arg6[%c0_23, %c0_24, %c0_25, %c0_26] : memref<1x1x8x8xf32, #tpu.memory_space<vmem>>, vector<1x1x8x8xf32>
    %30 = vector.shape_cast %29 : vector<1x1x8x8xf32> to vector<8x8xf32>
    %31 = vector.shape_cast %28 : vector<8x8xf32> to vector<1x1x8x8xf32>
    tpu.vector_store %arg6[%c0_23, %c0_24, %c0_25, %c0_26], %31 {strides = array<i32>} : memref<1x1x8x8xf32, #tpu.memory_space<vmem>>, vector<1x1x8x8xf32>,
    return
  }
  func.func @transform_0(%arg0: i32, %arg1: i32) -> (i32, i32, i32, i32) {
    %c0_i32 = arith.constant 0 : i32
    %c0_i32_0 = arith.constant 0 : i32
    %c0_i32_1 = arith.constant 0 : i32
    return %arg0, %arg1, %c0_i32, %c0_i32_0 : i32, i32, i32, i32
  }
  func.func @transform_1(%arg0: i32, %arg1: i32) -> (i32, i32, i32, i32) {
    %c0_i32 = arith.constant 0 : i32
    %c0_i32_0 = arith.constant 0 : i32
    %c0_i32_1 = arith.constant 0 : i32
    return %arg0, %arg1, %c0_i32, %c0_i32_0 : i32, i32, i32, i32
  }
  func.func @transform_2(%arg0: i32, %arg1: i32) -> (i32, i32, i32, i32) {
    %c0_i32 = arith.constant 0 : i32
    %c0_i32_0 = arith.constant 0 : i32
    %c0_i32_1 = arith.constant 0 : i32
    return %arg0, %arg1, %c0_i32, %c0_i32_0 : i32, i32, i32, i32
  }
  func.func @transform_3(%arg0: i32, %arg1: i32) -> (i32, i32, i32) {
    %c0_i32 = arith.constant 0 : i32
    %c0_i32_0 = arith.constant 0 : i32
    %c0_i32_1 = arith.constant 0 : i32
    return %arg0, %c0_i32, %c0_i32_0 : i32, i32, i32
  }
  func.func @transform_4(%arg0: i32, %arg1: i32) -> (i32, i32, i32, i32) {
    %c0_i32 = arith.constant 0 : i32
    %c0_i32_0 = arith.constant 0 : i32
    %c0_i32_1 = arith.constant 0 : i32
    return %arg0, %arg1, %c0_i32, %c0_i32_0 : i32, i32, i32, i32
  }
  func.func @transform_5(%arg0: i32, %arg1: i32) -> (i32, i32, i32, i32) {
    %c0_i32 = arith.constant 0 : i32
    %c0_i32_0 = arith.constant 0 : i32
    %c0_i32_1 = arith.constant 0 : i32
    return %arg0, %arg1, %c0_i32, %c0_i32_0 : i32, i32, i32, i32
  }
}

module attributes {stable_mosaic.version = 11 : i64} {
  func.func @_ffn_kernel(%arg0: i32, %arg1: memref<16x32xf32, #tpu.memory_space<vmem>>, %arg2: memref<1x32xf32, #tpu.memory_space<vmem>>, %arg3: memref<1x32xf32, #tpu.memory_space<vmem>>, %arg4: memref<32x64xf32, #tpu.memory_space<vmem>>, %arg5: memref<1x64xf32, #tpu.memory_space<vmem>>, %arg6: memref<64x32xf32, #tpu.memory_space<vmem>>, %arg7: memref<1x32xf32, #tpu.memory_space<vmem>>, %arg8: memref<16x32xf32, #tpu.memory_space<vmem>>) attributes {dimension_semantics = [#tpu.dimension_semantics<parallel>], iteration_bounds = array<i64: 1>, scalar_prefetch = 0 : i64, scratch_operands = 0 : i64, tpu.core_type = #tpu.core_type<tc>, window_params = [{transform_indices = @transform_0, window_bounds = array<i64: 16, 32>}, {pipeline_mode = #tpu.pipeline_mode<synchronous>, transform_indices = @transform_1, window_bounds = array<i64: 1, 32>}, {pipeline_mode = #tpu.pipeline_mode<synchronous>, transform_indices = @transform_2, window_bounds = array<i64: 1, 32>}, {pipeline_mode = #tpu.pipeline_mode<synchronous>, transform_indices = @transform_3, window_bounds = array<i64: 32, 64>}, {pipeline_mode = #tpu.pipeline_mode<synchronous>, transform_indices = @transform_4, window_bounds = array<i64: 1, 64>}, {pipeline_mode = #tpu.pipeline_mode<synchronous>, transform_indices = @transform_5, window_bounds = array<i64: 64, 32>}, {pipeline_mode = #tpu.pipeline_mode<synchronous>, transform_indices = @transform_6, window_bounds = array<i64: 1, 32>}, {transform_indices = @transform_7, window_bounds = array<i64: 16, 32>}]} {
    %c0 = arith.constant 0 : index
    %c0_0 = arith.constant 0 : index
    %0 = vector.load %arg1[%c0, %c0_0] : memref<16x32xf32, #tpu.memory_space<vmem>>, vector<16x32xf32>
    %cst = arith.constant dense<0.000000e+00> : vector<16xf32>
    %1 = vector.multi_reduction <add>, %0, %cst [1] : vector<16x32xf32> to vector<16xf32>
    %2 = vector.shape_cast %1 : vector<16xf32> to vector<16x1xf32>
    %cst_1 = arith.constant 3.200000e+01 : f32
    %3 = vector.broadcast %cst_1 : f32 to vector<16x1xf32>
    %4 = arith.divf %2, %3 : vector<16x1xf32>
    %5 = vector.broadcast %4 : vector<16x1xf32> to vector<16x32xf32>
    %6 = arith.subf %0, %5 : vector<16x32xf32>
    %7 = arith.mulf %6, %6 : vector<16x32xf32>
    %cst_2 = arith.constant dense<0.000000e+00> : vector<16xf32>
    %8 = vector.multi_reduction <add>, %7, %cst_2 [1] : vector<16x32xf32> to vector<16xf32>
    %9 = vector.shape_cast %8 : vector<16xf32> to vector<16x1xf32>
    %cst_3 = arith.constant 3.200000e+01 : f32
    %10 = vector.broadcast %cst_3 : f32 to vector<16x1xf32>
    %11 = arith.divf %9, %10 : vector<16x1xf32>
    %cst_4 = arith.constant 9.99999997E-7 : f32
    %12 = vector.broadcast %cst_4 : f32 to vector<16x1xf32>
    %13 = arith.addf %11, %12 : vector<16x1xf32>
    %14 = math.rsqrt %13 : vector<16x1xf32>
    %15 = vector.broadcast %14 : vector<16x1xf32> to vector<16x32xf32>
    %16 = arith.mulf %6, %15 : vector<16x32xf32>
    %c0_5 = arith.constant 0 : index
    %c0_6 = arith.constant 0 : index
    %17 = vector.load %arg2[%c0_5, %c0_6] : memref<1x32xf32, #tpu.memory_space<vmem>>, vector<1x32xf32>
    %18 = vector.broadcast %17 : vector<1x32xf32> to vector<16x32xf32>
    %19 = arith.mulf %16, %18 : vector<16x32xf32>
    %c0_7 = arith.constant 0 : index
    %c0_8 = arith.constant 0 : index
    %20 = vector.load %arg3[%c0_7, %c0_8] : memref<1x32xf32, #tpu.memory_space<vmem>>, vector<1x32xf32>
    %21 = vector.broadcast %20 : vector<1x32xf32> to vector<16x32xf32>
    %22 = arith.addf %19, %21 : vector<16x32xf32>
    %c0_9 = arith.constant 0 : index
    %c0_10 = arith.constant 0 : index
    %23 = vector.load %arg4[%c0_9, %c0_10] : memref<32x64xf32, #tpu.memory_space<vmem>>, vector<32x64xf32>
    %cst_11 = arith.constant dense<0.000000e+00> : vector<16x64xf32>
    %24 = tpu.matmul %22, %23, %cst_11 {dimension_numbers = #tpu.dot_dimension_numbers<[1], [0], [0], [1], [0, 0, 1, 1], [], []>} : vector<16x32xf32>, vector<32x64xf32>, vector<16x64xf32> -> vector<16x64xf32>
    %c0_12 = arith.constant 0 : index
    %c0_13 = arith.constant 0 : index
    %25 = vector.load %arg5[%c0_12, %c0_13] : memref<1x64xf32, #tpu.memory_space<vmem>>, vector<1x64xf32>
    %26 = vector.broadcast %25 : vector<1x64xf32> to vector<16x64xf32>
    %27 = arith.addf %24, %26 : vector<16x64xf32>
    %cst_14 = arith.constant 5.000000e-01 : f32
    %28 = vector.broadcast %cst_14 : f32 to vector<16x64xf32>
    %29 = arith.mulf %28, %27 : vector<16x64xf32>
    %cst_15 = arith.constant 4.471500e-02 : f32
    %30 = vector.broadcast %cst_15 : f32 to vector<16x64xf32>
    %31 = arith.mulf %30, %27 : vector<16x64xf32>
    %32 = arith.mulf %31, %27 : vector<16x64xf32>
    %33 = arith.mulf %32, %27 : vector<16x64xf32>
    %34 = arith.addf %27, %33 : vector<16x64xf32>
    %cst_16 = arith.constant 0.797884583 : f32
    %35 = vector.broadcast %cst_16 : f32 to vector<16x64xf32>
    %36 = arith.mulf %35, %34 : vector<16x64xf32>
    %37 = math.tanh %36 : vector<16x64xf32>
    %cst_17 = arith.constant 1.000000e+00 : f32
    %38 = vector.broadcast %cst_17 : f32 to vector<16x64xf32>
    %39 = arith.addf %38, %37 : vector<16x64xf32>
    %40 = arith.mulf %29, %39 : vector<16x64xf32>
    %c0_18 = arith.constant 0 : index
    %c0_19 = arith.constant 0 : index
    %41 = vector.load %arg6[%c0_18, %c0_19] : memref<64x32xf32, #tpu.memory_space<vmem>>, vector<64x32xf32>
    %cst_20 = arith.constant dense<0.000000e+00> : vector<16x32xf32>
    %42 = tpu.matmul %40, %41, %cst_20 {dimension_numbers = #tpu.dot_dimension_numbers<[1], [0], [0], [1], [0, 0, 1, 1], [], []>} : vector<16x64xf32>, vector<64x32xf32>, vector<16x32xf32> -> vector<16x32xf32>
    %c0_21 = arith.constant 0 : index
    %c0_22 = arith.constant 0 : index
    %43 = vector.load %arg7[%c0_21, %c0_22] : memref<1x32xf32, #tpu.memory_space<vmem>>, vector<1x32xf32>
    %44 = vector.broadcast %43 : vector<1x32xf32> to vector<16x32xf32>
    %45 = arith.addf %42, %44 : vector<16x32xf32>
    %46 = arith.addf %45, %0 : vector<16x32xf32>
    %c0_23 = arith.constant 0 : index
    %c0_24 = arith.constant 0 : index
    %47 = vector.load %arg8[%c0_23, %c0_24] : memref<16x32xf32, #tpu.memory_space<vmem>>, vector<16x32xf32>
    tpu.vector_store %arg8[%c0_23, %c0_24], %46 {strides = array<i32>} : memref<16x32xf32, #tpu.memory_space<vmem>>, vector<16x32xf32>,
    return
  }
  func.func @transform_0(%arg0: i32) -> (i32, i32) {
    %c0_i32 = arith.constant 0 : i32
    %c0_i32_0 = arith.constant 0 : i32
    return %arg0, %c0_i32 : i32, i32
  }
  func.func @transform_1(%arg0: i32) -> (i32, i32) {
    %c0_i32 = arith.constant 0 : i32
    %c0_i32_0 = arith.constant 0 : i32
    %c0_i32_1 = arith.constant 0 : i32
    return %c0_i32, %c0_i32_0 : i32, i32
  }
  func.func @transform_2(%arg0: i32) -> (i32, i32) {
    %c0_i32 = arith.constant 0 : i32
    %c0_i32_0 = arith.constant 0 : i32
    %c0_i32_1 = arith.constant 0 : i32
    return %c0_i32, %c0_i32_0 : i32, i32
  }
  func.func @transform_3(%arg0: i32) -> (i32, i32) {
    %c0_i32 = arith.constant 0 : i32
    %c0_i32_0 = arith.constant 0 : i32
    %c0_i32_1 = arith.constant 0 : i32
    return %c0_i32, %c0_i32_0 : i32, i32
  }
  func.func @transform_4(%arg0: i32) -> (i32, i32) {
    %c0_i32 = arith.constant 0 : i32
    %c0_i32_0 = arith.constant 0 : i32
    %c0_i32_1 = arith.constant 0 : i32
    return %c0_i32, %c0_i32_0 : i32, i32
  }
  func.func @transform_5(%arg0: i32) -> (i32, i32) {
    %c0_i32 = arith.constant 0 : i32
    %c0_i32_0 = arith.constant 0 : i32
    %c0_i32_1 = arith.constant 0 : i32
    return %c0_i32, %c0_i32_0 : i32, i32
  }
  func.func @transform_6(%arg0: i32) -> (i32, i32) {
    %c0_i32 = arith.constant 0 : i32
    %c0_i32_0 = arith.constant 0 : i32
    %c0_i32_1 = arith.constant 0 : i32
    return %c0_i32, %c0_i32_0 : i32, i32
  }
  func.func @transform_7(%arg0: i32) -> (i32, i32) {
    %c0_i32 = arith.constant 0 : i32
    %c0_i32_0 = arith.constant 0 : i32
    return %arg0, %c0_i32 : i32, i32
  }
}

module attributes {stable_mosaic.version = 11 : i64} {
  func.func @_layernorm_kernel(%arg0: i32, %arg1: memref<16x32xf32, #tpu.memory_space<vmem>>, %arg2: memref<1x32xf32, #tpu.memory_space<vmem>>, %arg3: memref<1x32xf32, #tpu.memory_space<vmem>>, %arg4: memref<16x32xf32, #tpu.memory_space<vmem>>) attributes {dimension_semantics = [#tpu.dimension_semantics<parallel>], iteration_bounds = array<i64: 1>, scalar_prefetch = 0 : i64, scratch_operands = 0 : i64, tpu.core_type = #tpu.core_type<tc>, window_params = [{transform_indices = @transform_0, window_bounds = array<i64: 16, 32>}, {pipeline_mode = #tpu.pipeline_mode<synchronous>, transform_indices = @transform_1, window_bounds = array<i64: 1, 32>}, {pipeline_mode = #tpu.pipeline_mode<synchronous>, transform_indices = @transform_2, window_bounds = array<i64: 1, 32>}, {transform_indices = @transform_3, window_bounds = array<i64: 16, 32>}]} {
    %c0 = arith.constant 0 : index
    %c0_0 = arith.constant 0 : index
    %0 = vector.load %arg1[%c0, %c0_0] : memref<16x32xf32, #tpu.memory_space<vmem>>, vector<16x32xf32>
    %cst = arith.constant dense<0.000000e+00> : vector<16xf32>
    %1 = vector.multi_reduction <add>, %0, %cst [1] : vector<16x32xf32> to vector<16xf32>
    %2 = vector.shape_cast %1 : vector<16xf32> to vector<16x1xf32>
    %cst_1 = arith.constant 3.200000e+01 : f32
    %3 = vector.broadcast %cst_1 : f32 to vector<16x1xf32>
    %4 = arith.divf %2, %3 : vector<16x1xf32>
    %5 = vector.broadcast %4 : vector<16x1xf32> to vector<16x32xf32>
    %6 = arith.subf %0, %5 : vector<16x32xf32>
    %7 = arith.mulf %6, %6 : vector<16x32xf32>
    %cst_2 = arith.constant dense<0.000000e+00> : vector<16xf32>
    %8 = vector.multi_reduction <add>, %7, %cst_2 [1] : vector<16x32xf32> to vector<16xf32>
    %9 = vector.shape_cast %8 : vector<16xf32> to vector<16x1xf32>
    %cst_3 = arith.constant 3.200000e+01 : f32
    %10 = vector.broadcast %cst_3 : f32 to vector<16x1xf32>
    %11 = arith.divf %9, %10 : vector<16x1xf32>
    %cst_4 = arith.constant 9.99999997E-7 : f32
    %12 = vector.broadcast %cst_4 : f32 to vector<16x1xf32>
    %13 = arith.addf %11, %12 : vector<16x1xf32>
    %14 = math.rsqrt %13 : vector<16x1xf32>
    %15 = vector.broadcast %14 : vector<16x1xf32> to vector<16x32xf32>
    %16 = arith.mulf %6, %15 : vector<16x32xf32>
    %c0_5 = arith.constant 0 : index
    %c0_6 = arith.constant 0 : index
    %17 = vector.load %arg2[%c0_5, %c0_6] : memref<1x32xf32, #tpu.memory_space<vmem>>, vector<1x32xf32>
    %18 = vector.broadcast %17 : vector<1x32xf32> to vector<16x32xf32>
    %19 = arith.mulf %16, %18 : vector<16x32xf32>
    %c0_7 = arith.constant 0 : index
    %c0_8 = arith.constant 0 : index
    %20 = vector.load %arg3[%c0_7, %c0_8] : memref<1x32xf32, #tpu.memory_space<vmem>>, vector<1x32xf32>
    %21 = vector.broadcast %20 : vector<1x32xf32> to vector<16x32xf32>
    %22 = arith.addf %19, %21 : vector<16x32xf32>
    %c0_9 = arith.constant 0 : index
    %c0_10 = arith.constant 0 : index
    %23 = vector.load %arg4[%c0_9, %c0_10] : memref<16x32xf32, #tpu.memory_space<vmem>>, vector<16x32xf32>
    tpu.vector_store %arg4[%c0_9, %c0_10], %22 {strides = array<i32>} : memref<16x32xf32, #tpu.memory_space<vmem>>, vector<16x32xf32>,
    return
  }
  func.func @transform_0(%arg0: i32) -> (i32, i32) {
    %c0_i32 = arith.constant 0 : i32
    %c0_i32_0 = arith.constant 0 : i32
    return %arg0, %c0_i32 : i32, i32
  }
  func.func @transform_1(%arg0: i32) -> (i32, i32) {
    %c0_i32 = arith.constant 0 : i32
    %c0_i32_0 = arith.constant 0 : i32
    %c0_i32_1 = arith.constant 0 : i32
    return %c0_i32, %c0_i32_0 : i32, i32
  }
  func.func @transform_2(%arg0: i32) -> (i32, i32) {
    %c0_i32 = arith.constant 0 : i32
    %c0_i32_0 = arith.constant 0 : i32
    %c0_i32_1 = arith.constant 0 : i32
    return %c0_i32, %c0_i32_0 : i32, i32
  }
  func.func @transform_3(%arg0: i32) -> (i32, i32) {
    %c0_i32 = arith.constant 0 : i32
    %c0_i32_0 = arith.constant 0 : i32
    return %arg0, %c0_i32 : i32, i32
  }
}

</mosaic_0001>

<bundles_post_ra>
// kernel: decoder_forward.23
= control target key start
LH: loop header
LB: loop body
LE: loop exit
PB: predicated region body
PF: predicated region fallthrough
CT: control target
= control target key end

     0   :  { %vm16_vm0 = vcmask 261120   ;;  %s118_s0 = inlined_call_operand.vmem [shape: f32[16,32], index: 0, kind: input, shape index: {}]   ;;  %s119_s1 = inlined_call_operand.vmem [shape: f32[1,32], index: 1, kind: input, shape index: {}]   ;;  %s120_s2 = inlined_call_operand.vmem [shape: f32[1,32], index: 2, kind: input, shape index: {}]   ;;  %s121_s3 = inlined_call_operand.vmem [shape: f32[16,32], index: 3, kind: output, shape index: {}]  }
   0x1   :  { %v14_v0 = vld [vmem:[%s118_s0] sm:$0xff]  ;;  %v15_v1 = vld [vmem:[%s118_s0 + $0x8] sm:$0xff] }
   0x2   :  { %v17_v2 = vsel %vm16_vm0, %v14_v0, 0.0  ;;  %v20_v3 = vsel %vm16_vm0, %v15_v1, 0.0  ;;  %v68_v21 = vld [vmem:[%s119_s1] ss:$0 sm:$0xff] }
   0x3   :  { %18 = vadd.xlane.f32.xlu0 %v17_v2  ;;  %v69_v23 = vld [vmem:[%s120_s2] ss:$0 sm:$0xff] }
   0x7   :  { %21 = vadd.xlane.f32.xlu0 %v20_v3 }
  0x90   :  { %v19_v4 = vpop.xlane.xlu0 %18 }
  0x91   :  { %v24_v5 = vmul.f32 0.03125, %v19_v4 }
  0x93   :  { %v26_v6 = vsub.f32 %v14_v0, %v24_v5 }
  0x94   :  { %v22_v7 = vpop.xlane.xlu0 %21 }
  0x95   :  { %v25_v8 = vmul.f32 0.03125, %v22_v7  ;;  %v28_v9 = vmul.f32 %v26_v6, %v26_v6 }
  0x97   :  { %v27_v10 = vsub.f32 %v15_v1, %v25_v8  ;;  %v30_v11 = vsel %vm16_vm0, %v28_v9, 0.0 }
  0x98   :  { %31 = vadd.xlane.f32.xlu1 %v30_v11 }
  0x99   :  { %v29_v12 = vmul.f32 %v27_v10, %v27_v10 }
  0x9b   :  { %v33_v13 = vsel %vm16_vm0, %v29_v12, 0.0 }
  0x9c   :  { %34 = vadd.xlane.f32.xlu1 %v33_v13 }
 0x125   :  { %v32_v14 = vpop.xlane.xlu1 %31 }
 0x126   :  { %v36_v15 = vmul.f32 0.03125, %v32_v14 }
 0x128   :  { %v38_v16 = vadd.f32 1e-06, %v36_v15 }
 0x129   :  { %v35_v17 = vpop.xlane.xlu1 %34 }
 0x12a   :  { %70 = vrsqrt.f32 %v38_v16  ;;  %v37_v18 = vmul.f32 0.03125, %v35_v17 }
 0x12c   :  { %v39_v19 = vadd.f32 1e-06, %v37_v18 }
 0x12e   :  { %72 = vrsqrt.f32 %v39_v19 }
 0x134   :  { %v71_v20 = vpop.eup %70 }
 0x135   :  { %v42_v22 = vmul.f32 %v71_v20, %v26_v6 }
 0x137   :  { %v51_v24 = vmul.f32 %v68_v21, %v42_v22 }
 0x138   :  { %v73_v25 = vpop.eup %72 }
 0x139   :  { %v60_v26 = vadd.f32 %v69_v23, %v51_v24  ;;  %v43_v27 = vmul.f32 %v73_v25, %v27_v10 }
 0x13b   :  { %62 = vst.msk [vmem:[%s121_s3] sm:$0xff] %vm16_vm0, %v60_v26  ;;  %v52_v28 = vmul.f32 %v68_v21, %v43_v27 }
 0x13d   :  { %v61_v29 = vadd.f32 %v69_v23, %v52_v28 }
 0x13f   :  { %63 = vst.msk [vmem:[%s121_s3 + $0x8] sm:$0xff] %vm16_vm0, %v61_v29 }

// kernel: decoder_forward.22
= control target key start
LH: loop header
LB: loop body
LE: loop exit
PB: predicated region body
PF: predicated region fallthrough
CT: control target
= control target key end

     0   :  { %s219_s9 = smov 0   ;;  %s247_s0 = inlined_call_operand.vmem [shape: f32[2,8,32], index: 0, kind: input, shape index: {}]   ;;  %s248_s1 = inlined_call_operand.vmem [shape: f32[8,32], index: 1, kind: input, shape index: {}]   ;;  %s249_s2 = inlined_call_operand.vmem [shape: f32[2,8,32], index: 2, kind: output, shape index: {}]  }
   0x1 LB: > { %s198_s10 = sadd.s32 4294967295, %s221_s9   ;;  %p202_p0 = scmp.ge.s32.totalorder %s221_s9, 1  ;;  %s221_s9 = sphi %s219_s9, %s12_s9  }
   0x2   : > { %p111_p1 = scmp.lt.s32.totalorder %s221_s9, 3 }
   0x4   : > { %p112_p2 = pnand %p202_p0, %p111_p1 }
   0x5   : > { %p131_p3 = scmp.lt.s32.totalorder (!%p112_p2), %s198_s10, 1  ;;  %v141_v1 = vld [vmem:[%s248_s1] sm:$0xff] (!%p112_p2)  ;;  %vm143_vm0 = vcmask (!%p112_p2), 261120  }
   0x6   : > { %115 = sbr.rel (%p112_p2) target bundleno = 22 (0x16), region = 28 }
   0xd   : > { %s251_s10 = smov (!%p131_p3, %s198_s10), 1 }
   0xe   : > { %s203_s11 = sshll.u32 %s251_s10, 3 }
   0xf   : > { %s134_s14 = scalar_lea.vmem %s247_s0, %s203_s11  ;;  %s138_s19 = scalar_lea.vmem %s249_s2, %s203_s11 }
  0x10   : > { %v139_v0 = vld [vmem:[%s134_s14] sm:$0xff] }
  0x11   : > { %v140_v2 = vmul.f32 5.656854, %v139_v0 }
  0x13   : > { %v142_v3 = vadd.f32 %v141_v1, %v140_v2 }
  0x15   : > { %144 = vst.msk [vmem:[%s138_s19] sm:$0xff] %vm143_vm0, %v142_v3 }
  0x16 PF: > { %s12_s9 = sadd.s32 1, %s221_s9  }
  0x17   : > { %p9_p4 = scmp.ge.s32.totalorder %s12_s9, 4  }
  0x19   :  { %11 = sbr.rel (!%p9_p4) target bundleno = 1 (0x1), region = 58 }

// kernel: decoder_forward.24
= control target key start
LH: loop header
LB: loop body
LE: loop exit
PB: predicated region body
PF: predicated region fallthrough
CT: control target
= control target key end

     0   :  { %vm27_vm0 = vcmask 261120   ;;  %vm109_vm1 = vcmask 785408   ;;  %s191_s1 = inlined_call_operand.vmem [shape: f32[32,96], index: 1, kind: input, shape index: {}]   ;;  %s192_s0 = inlined_call_operand.vmem [shape: f32[16,32], index: 0, kind: input, shape index: {}]   ;;  %s193_s2 = inlined_call_operand.vmem [shape: f32[1,96], index: 2, kind: input, shape index: {}]   ;;  %s194_s3 = inlined_call_operand.vmem [shape: f32[16,96], index: 3, kind: output, shape index: {}]  }
   0x1   :  { %v16_v0 = vld [vmem:[%s191_s1] sm:$0xff]  ;;  %v17_v1 = vld [vmem:[%s191_s1 + $0x8] sm:$0xff]  ;;  %v18_v2 = vld [vmem:[%s191_s1 + $0x10] sm:$0xff] }
   0x2   :  { %v136_v3 = vpack.c.bf16 %v17_v1, %v16_v0  ;;  %v19_v4 = vld [vmem:[%s191_s1 + $0x18] sm:$0xff]  ;;  %v14_v5 = vld [vmem:[%s192_s0] sm:$0xff]  ;;  %v15_v7 = vld [vmem:[%s192_s0 + $0x8] sm:$0xff] }
   0x3   :  { %v140_v6 = vpack.c.bf16 %v19_v4, %v18_v2  ;;  %133 = vmatprep.mubr.msk.f32.mxu0 %vm27_vm0, %v14_v5  ;;  %v116_v8 = vld [vmem:[%s193_s2] ss:$0 sm:$0xff] }
   0x4   :  { %137 = vmatprep.subr.bf16.mxu0 %v136_v3 }
   0x5   :  { %139 = vmatpush3.bf16.msra.mxu0 %v136_v3 }
   0x6   :  { %141 = vmatprep.subr.bf16.mxu0 %v140_v6 }
   0x9   :  { %143 = vmatpush3.bf16.msra.mxu0 %v140_v6 }
   0xc   :  { %134 = vmatmul.mubr.msk.f32.vlgmr.msra.gmra.mrb[0].mxu0 %vm27_vm0, %v15_v7 }
  0xdf   :  { %v135_v9 = vpop.f32.mrb[0].mxu0 }
  0xe0   :  { %v106_v10 = vadd.f32 %v135_v9, %v116_v8  ;;  %v100_v11 = vpop.f32.mrb[1].mxu0 }
  0xe1   :  { %v101_v12 = vadd.f32 %v116_v8, %v100_v11 }
  0xe2   :  { %111 = vst.msk [vmem:[%s194_s3 + $0x8] sm:$0xff] %vm109_vm1, %v106_v10 }
  0xe3   :  { %110 = vst.msk [vmem:[%s194_s3] sm:$0xff] %vm109_vm1, %v101_v12 }

// kernel: decoder_forward.25
= control target key start
LH: loop header
LB: loop body
LE: loop exit
PB: predicated region body
PF: predicated region fallthrough
CT: control target
= control target key end

     0   :  { %s1106_s0 = inlined_call_operand.vmem [shape: f32[2,4,8,8], index: 0, kind: input, shape index: {}]   ;;  %s1107_s1 = inlined_call_operand.vmem [shape: f32[2,4,8,8], index: 1, kind: input, shape index: {}]   ;;  %s1108_s2 = inlined_call_operand.vmem [shape: f32[2,4,8,8], index: 2, kind: input, shape index: {}]   ;;  %s1109_s3 = inlined_call_operand.vmem [shape: s32[2,8,8], index: 3, kind: input, shape index: {}]   ;;  %s1110_s4 = inlined_call_operand.vmem [shape: f32[2,4,8,8], index: 4, kind: output, shape index: {0}]   ;;  %s1111_s5 = inlined_call_operand.hbm [shape: f32[2,4,8,8], index: 5, kind: output, shape index: {1}]  }
   0x1   :  { %1112 = sst [smem:[#allocation5_spill]] %s1106_s0 }
   0x2   :  { %1113 = sst [smem:[#allocation6_spill]] %s1107_s1 }
   0x3   :  { %1114 = sst [smem:[#allocation7_spill]] %s1108_s2 }
   0x4   :  { %11 = vsyncpa [#allocation3], 0 }
   0x5   :  { %13 = vsyncpa [#allocation3 + $0x1], 0  ;;  %s950_s18 = smov 0   ;;  %s952_s19 = smov 0  }
   0x6   :  { %s954_s20 = smov 0   ;;  %s956_s21 = smov 0  }
   0x7   :  { %s958_s22 = smov 0   ;;  %s960_s23 = smov 0  }
   0x8   :  { %s962_s24 = smov 0   ;;  %s964_s25 = smov 0  }
   0x9 LB: > { %s707_s26 = sadd.s32 4294967295, %s915_s25   ;;  %s708_s27 = sadd.s32 4294967294, %s915_s25   ;;  %s915_s25 = sphi %s964_s25, %s19_s25   ;;  %s911_s24 = sphi %s962_s24, %s1126_s24   ;;  %s907_s23 = sphi %s960_s23, %s1125_s23   ;;  %s903_s22 = sphi %s958_s22, %s1124_s22   ;;  %s899_s21 = sphi %s956_s21, %s1123_s21   ;;  %s895_s20 = sphi %s954_s20, %s1122_s20   ;;  %s891_s19 = sphi %s952_s19, %s1121_s19   ;;  %s887_s18 = sphi %s950_s18, %s1120_s18  }
   0xa   : > { %s28_s28 = sadd.s32 1, %s907_s23  ;;  %s31_s29 = sadd.s32 1, %s911_s24 }
   0xb   : > { %p29_p0 = scmp.ge.s32.totalorder %s28_s28, 4  ;;  %p188_p1 = scmp.ne.s32.totalorder %s895_s20, %s891_s19 }
   0xc   : > { %p189_p2 = scmp.eq.s32.totalorder %s707_s26, 7  ;;  %p194_p5 = scmp.ne.s32.totalorder %s891_s19, %s887_s18 }
   0xd   : > { %s1128_s28 = smov (%p29_p0, %s28_s28), 0  ;;  %s1130_s29 = smov (!%p29_p0, %s31_s29), %s911_s24 }
   0xe   : > { %s174_s30 = ssub.s32 %s907_s23, %s1128_s28  ;;  %p1001_p3 = por %p189_p2, %p188_p1 }
   0xf   : > { %p33_p4 = scmp.ge.s32.totalorder %s1130_s29, 2  ;;  %p195_p6 = scmp.eq.s32.totalorder %s708_s27, 7 }
  0x10   : > { %p711_p7 = scmp.ge.s32.totalorder %s915_s25, 1  ;;  %p253_p9 = scmp.lt.s32.totalorder %s915_s25, 9 }
  0x11   : > { %s1132_s29 = smov (%p33_p4, %s1130_s29), 0  ;;  %p1010_p8 = por %p195_p6, %p194_p5 }
  0x12   : > { %s173_s8 = ssub.s32 %s911_s24, %s1132_s29  ;;  %s178_s9 = sadd.s32 1, %s895_s20 }
  0x13   : > { %s175_s10 = sor.u32 %s174_s30, %s173_s8  ;;  %p254_p10 = pnand %p711_p7, %p253_p9 }
  0x14   : > { %p176_p11 = scmp.eq.s32.totalorder %s175_s10, 0  ;;  %p312_p12 = scmp.lt.s32.totalorder (!%p254_p10), %s903_s22, 1  ;;  %v917_v0 = vmov (!%p254_p10), 0.0   ;;  %vm918_vm0 = vmmov (!%p254_p10), 0   ;;  %vm352_vm1 = vcmask (!%p254_p10), 64512  }
  0x15   : > { %257 = sbr.rel (%p254_p10) target bundleno = 778 (0x30a), region = 36  ;;  %p314_p13 = scmp.lt.s32.totalorder (!%p254_p10), %s899_s21, 3  ;;  %734 = vmatprep.subr.mxu0 (!%p254_p10), %v917_v0  ;;  %736 = vmatprep.mubr.msk.f32.mxu0 (!%p254_p10), %vm918_vm0, %v917_v0 }
  0x16   : > { %s1019_s11 = scalar_select %p176_p11, %s895_s20, %s178_s9  }
  0x17   : > { %739 = vmatprep.subr.mxu1 (!%p254_p10), %v917_v0  ;;  %741 = vmatprep.mubr.msk.f32.mxu1 (!%p254_p10), %vm918_vm0, %v917_v0  ;;  %s1117_s1 = sld [smem:[#allocation6_spill]] (!%p254_p10)  ;;  %s1118_s0 = sld [smem:[#allocation5_spill]] (!%p254_p10) }
  0x18   : > { %s1119_s2 = sld [smem:[#allocation7_spill]] (!%p254_p10) }
  0x1c   : > { %s313_s12 = scalar_select %p312_p12, %s903_s22, 1 }
  0x1d   : > { %s315_s13 = scalar_select %p314_p13, %s899_s21, 3 }
  0x1e   : > { %s713_s14 = sshll.u32 %s313_s12, 2  ;;  %s719_s10 = sshll.u32 %s313_s12, 3 }
  0x1f   : > { %s317_s15 = sadd.s32 %s713_s14, %s315_s13 }
  0x20   : > { %s1025_s16 = sshll.u32 %s317_s15, 3  ;;  %s339_s15 = scalar_lea.vmem %s1109_s3, %s719_s10 }
  0x21   : > { %s327_s27 = scalar_lea.vmem %s1117_s1, %s1025_s16  ;;  %s319_s9 = scalar_lea.vmem %s1118_s0, %s1025_s16  ;;  %v429_v4 = vld [vmem:[%s339_s15] sm:$0xff] }
  0x22   : > { %v350_v1 = vld [vmem:[%s327_s27] sm:$0xff]  ;;  %vm430_vm2 = vcmp.ne.s32.totalorder %v429_v4, 0  ;;  %s335_s26 = scalar_lea.vmem %s1119_s2, %s1025_s16  ;;  %s309_s27 = sand.u32 1, %s891_s19  }
  0x23   : > { %v348_v2 = vld [vmem:[%s319_s9] sm:$0xff]  ;;  %735 = vmatpush3.xpose.msk.msra.mxu0 %vm352_vm1, %v350_v1  ;;  %s712_s30 = sshll.u32 %s309_s27, 3  ;;  %s726_s9 = sshll.u32 %s903_s22, 2 }
  0x24   : > { %v349_v3 = vmul.f32 0.35355338, %v348_v2  ;;  %v351_v14 = vld [vmem:[%s335_s26] sm:$0xff]  ;;  %s311_s8 = scalar_lea.vmem [#allocation2], %s712_s30  ;;  %s541_s10 = sadd.s32 %s899_s21, %s726_s9 }
  0x25   : > { %740 = vmatpush3.msra.mxu1 %v351_v14  ;;  %s727_s13 = sshll.u32 %s541_s10, 7  ;;  %s545_s14 = sshll.u32 %s311_s8, 4  ;;  %s546_s14 = int_to_ptr.vmem [resolvable:$true] %s545_s14 }
  0x26   : > { %737 = vmatmul.mubr.msk.f32.vlgmr.msra.gmra.mrb[0].mxu0 %vm352_vm1, %v349_v3  ;;  %s1054_s17 = scalar_lea.hbm %s1111_s5, %s727_s13  ;;  %s527_s26 = scalar_lea.sflag [#allocation3], %s309_s27 }
  0x27   : > { %s821_s0 = scalar_lea.vmem %s546_s14, 128  ;;  %s919_s1 = smov [#allocation2]  }
  0x28   : > { %p822_p0 = scmp.ne.s32.totalorder %s546_s14, %s821_s0  ;;  %s825_s30 = sshll.u32 %s919_s1, 4  ;;  %s826_s30 = int_to_ptr.vmem [resolvable:$false] %s825_s30 }
  0x29   : > { %s827_s2 = scalar_lea.vmem %s826_s30, 256  ;;  %p828_p4 = scmp.lt.s32.totalorder %s546_s14, %s826_s30 }
  0x2a   : > { %p823_p1 = pnand %p822_p0, %p1001_p3  ;;  %p829_p5 = scmp.lt.s32.totalorder %s827_s2, %s821_s0 }
  0x2c   : > { %p824_p2 = pneg %p823_p1  ;;  %p830_p6 = por %p829_p5, %p828_p4 }
  0x2e   : > { %p831_p7 = pnand %p830_p6, %p824_p2 }
  0xf9   : > { %v425_v5 = vpop.f32.mrb[0].mxu0 }
  0xfa   : > { %v431_v6 = vsel %vm430_vm2, -1e+18, %v425_v5  ;;  %v738_v7 = vpop.f32.mrb[1].mxu0 }
  0xfb   : > { %v432_v8 = vsel %vm352_vm1, %v431_v6, -inf }
  0xfc   : > { %433 = vmax.xlane.f32.xlu0 %v432_v8 }
 0x189   : > { %v434_v9 = vpop.xlane.xlu0 %433 }
 0x18a   : > { %v435_v10 = vsub.f32 %v431_v6, %v434_v9 }
 0x18c   : > { %v436_v11 = vmul.f32 1.442695, %v435_v10 }
 0x18e   : > { %817 = vpow2.f32 %v436_v11 }
 0x198   : > { %v818_v12 = vpop.eup %817 }
 0x199   : > { %v438_v13 = vsel %vm352_vm1, %v818_v12, 0.0 }
 0x19a   : > { %439 = vadd.xlane.f32.xlu0 %v438_v13 }
 0x227   : > { %v440_v15 = vpop.xlane.xlu0 %439 }
 0x228   : > { %819 = vrcp.f32 %v440_v15 }
 0x232   : > { %v820_v16 = vpop.eup %819 }
 0x233   : > { %v442_v17 = vmul.f32 %v820_v16, %v818_v12 }
 0x235   : > { %742 = vmatmul.mubr.msk.f32.vlgmr.msra.gmra.mrb[0].mxu1 %vm352_vm1, %v442_v17  ;;  %443 = vst.msk [vmem:[%s311_s8] sm:$0xff] %vm352_vm1, %v442_v17 }
 0x236   : > { %834 = shalt.err (!%p831_p7)
}
 0x237   : > { %s835_s21 = scalar_lea.hbm %s1054_s17, 128  ;;  %s839_s1 = scalar_lea.hbm %s1111_s5, 1024 }
 0x238   : > { %p836_p9 = scmp.ne.s32.totalorder %s1054_s17, %s835_s21  ;;  %p840_p12 = scmp.lt.u32.totalorder %s1054_s17, %s1111_s5 }
 0x239   : > { %p841_p13 = scmp.lt.u32.totalorder %s839_s1, %s835_s21  ;;  %p843_p1 = scmp.lt.u32.totalorder %s835_s21, %s1054_s17 }
 0x23a   : > { %p837_p10 = pnand %p836_p9, %p1001_p3 }
 0x23b   : > { %p842_p0 = por %p841_p13, %p840_p12 }
 0x23c   : > { %p838_p11 = pneg %p837_p10 }
 0x23d   : > { %p844_p2 = por %p843_p1, %p842_p0 }
 0x23f   : > { %p845_p4 = pnand %p844_p2, %p838_p11 }
 0x241   : > { %848 = shalt.err (!%p845_p4)
}
 0x242   : > { %744 = dma.vmem_to_hbm [thread:$0]  (%p1001_p3), %s546_s14, 128, %s1054_s17, %s527_s26  }
 0x243   : > { %s347_s10 = scalar_lea.vmem %s1110_s4, %s1025_s16 }
 0x308   : > { %v513_v18 = vpop.f32.mrb[0].mxu1 }
 0x309   : > { %517 = vst.msk [vmem:[%s347_s10] sm:$0xff] %vm352_vm1, %v513_v18  ;;  %v743_v19 = vpop.f32.mrb[1].mxu1 }
 0x30a PF: > { %p750_p5 = scmp.ge.s32.totalorder %s915_s25, 2  ;;  %s568_s13 = sand.u32 1, %s887_s18  }
 0x30b   : > { %s569_s6 = scalar_lea.sflag [#allocation3], %s568_s13 }
 0x30c   : > { %p747_p6 = pnand %p750_p5, %p1010_p8 }
 0x30e   : > { %882 = dma.done.wait (!%p747_p6), %s569_s6, 128  }
 0x30f   : > { %884 = vsyncadd (!%p747_p6), %s569_s6, 4294967168  ;;  %s19_s25 = sadd.s32 1, %s915_s25   ;;  %s1120_s18 = smov %s891_s19 }
 0x310   : > { %p16_p3 = scmp.ge.s32.totalorder %s19_s25, 10   ;;  %s1121_s19 = smov %s895_s20 }
 0x311   : > { %s1122_s20 = smov %s1019_s11  ;;  %s1123_s21 = smov %s907_s23 }
 0x312   : > { %s1124_s22 = smov %s911_s24  ;;  %s1125_s23 = smov %s1128_s28 }
 0x313   : > { %s1126_s24 = smov %s1132_s29  ;;  %18 = sbr.rel (!%p16_p3) target bundleno = 9 (0x9), region = 92 }
 0x31a   :  { %574 = vsyncpa [#allocation3], 1 }
 0x31b   :  { %576 = vsyncpa [#allocation3 + $0x1], 1 }

// kernel: decoder_forward.28
= control target key start
LH: loop header
LB: loop body
LE: loop exit
PB: predicated region body
PF: predicated region fallthrough
CT: control target
= control target key end

     0   :  { %vm27_vm0 = vcmask 261120   ;;  %s194_s1 = inlined_call_operand.vmem [shape: f32[32,32], index: 1, kind: input, shape index: {}]   ;;  %s195_s0 = inlined_call_operand.vmem [shape: f32[16,32], index: 0, kind: input, shape index: {}]   ;;  %s196_s2 = inlined_call_operand.vmem [shape: f32[1,32], index: 2, kind: input, shape index: {}]   ;;  %s197_s3 = inlined_call_operand.vmem [shape: f32[16,32], index: 3, kind: output, shape index: {}]  }
   0x1   :  { %v16_v0 = vld [vmem:[%s194_s1] sm:$0xff]  ;;  %v17_v1 = vld [vmem:[%s194_s1 + $0x8] sm:$0xff]  ;;  %v18_v2 = vld [vmem:[%s194_s1 + $0x10] sm:$0xff] }
   0x2   :  { %v135_v3 = vpack.c.bf16 %v17_v1, %v16_v0  ;;  %v19_v4 = vld [vmem:[%s194_s1 + $0x18] sm:$0xff]  ;;  %v14_v5 = vld [vmem:[%s195_s0] sm:$0xff]  ;;  %v15_v7 = vld [vmem:[%s195_s0 + $0x8] sm:$0xff] }
   0x3   :  { %v139_v6 = vpack.c.bf16 %v19_v4, %v18_v2  ;;  %132 = vmatprep.mubr.msk.f32.mxu0 %vm27_vm0, %v14_v5  ;;  %v115_v8 = vld [vmem:[%s196_s2] ss:$0 sm:$0xff] }
   0x4   :  { %136 = vmatprep.subr.bf16.mxu0 %v135_v3 }
   0x5   :  { %138 = vmatpush3.bf16.msra.mxu0 %v135_v3 }
   0x6   :  { %140 = vmatprep.subr.bf16.mxu0 %v139_v6 }
   0x9   :  { %142 = vmatpush3.bf16.msra.mxu0 %v139_v6 }
   0xc   :  { %133 = vmatmul.mubr.msk.f32.vlgmr.msra.gmra.mrb[0].mxu0 %vm27_vm0, %v15_v7 }
  0xdf   :  { %v134_v9 = vpop.f32.mrb[0].mxu0 }
  0xe0   :  { %v106_v10 = vadd.f32 %v134_v9, %v115_v8  ;;  %v100_v11 = vpop.f32.mrb[1].mxu0 }
  0xe1   :  { %v101_v12 = vadd.f32 %v115_v8, %v100_v11 }
  0xe2   :  { %110 = vst.msk [vmem:[%s197_s3 + $0x8] sm:$0xff] %vm27_vm0, %v106_v10 }
  0xe3   :  { %109 = vst.msk [vmem:[%s197_s3] sm:$0xff] %vm27_vm0, %v101_v12 }

// kernel: decoder_forward.29
= control target key start
LH: loop header
LB: loop body
LE: loop exit
PB: predicated region body
PF: predicated region fallthrough
CT: control target
= control target key end

     0   :  { %vm29_vm0 = vcmask 261120   ;;  %vm127_vm1 = vcmask 523264   ;;  %s238_s1 = inlined_call_operand.vmem [shape: f32[32,64], index: 1, kind: input, shape index: {}]   ;;  %s239_s0 = inlined_call_operand.vmem [shape: f32[32,32], index: 0, kind: input, shape index: {}]   ;;  %s240_s2 = inlined_call_operand.vmem [shape: f32[1,64], index: 2, kind: input, shape index: {}]   ;;  %s241_s3 = inlined_call_operand.vmem [shape: f32[32,64], index: 3, kind: output, shape index: {}]  }
   0x1   :  { %v18_v0 = vld [vmem:[%s238_s1] sm:$0xff]  ;;  %v19_v1 = vld [vmem:[%s238_s1 + $0x8] sm:$0xff]  ;;  %v20_v2 = vld [vmem:[%s238_s1 + $0x10] sm:$0xff] }
   0x2   :  { %v163_v3 = vpack.c.bf16 %v19_v1, %v18_v0  ;;  %v21_v4 = vld [vmem:[%s238_s1 + $0x18] sm:$0xff]  ;;  %v14_v5 = vld [vmem:[%s239_s0] sm:$0xff]  ;;  %v16_v6 = vld [vmem:[%s239_s0 + $0x10] sm:$0xff] }
   0x3   :  { %v167_v7 = vpack.c.bf16 %v21_v4, %v20_v2  ;;  %157 = vmatprep.mubr.msk.f32.mxu0 %vm29_vm0, %v14_v5  ;;  %160 = vmatprep.mubr.msk.f32.mxu1 %vm29_vm0, %v16_v6  ;;  %v15_v8 = vld [vmem:[%s239_s0 + $0x8] sm:$0xff]  ;;  %v17_v9 = vld [vmem:[%s239_s0 + $0x18] sm:$0xff]  ;;  %v136_v10 = vld [vmem:[%s240_s2] ss:$0 sm:$0xff] }
   0x4   :  { %164 = vmatprep.subr.bf16.mxu0 %v163_v3  ;;  %171 = vmatprep.subr.bf16.mxu1 %v163_v3 }
   0x5   :  { %166 = vmatpush3.bf16.msra.mxu0 %v163_v3  ;;  %173 = vmatpush3.bf16.msra.mxu1 %v163_v3 }
   0x6   :  { %168 = vmatprep.subr.bf16.mxu0 %v167_v7  ;;  %172 = vmatprep.subr.bf16.mxu1 %v167_v7 }
   0x9   :  { %170 = vmatpush3.bf16.msra.mxu0 %v167_v7  ;;  %174 = vmatpush3.bf16.msra.mxu1 %v167_v7 }
   0xc   :  { %158 = vmatmul.mubr.msk.f32.vlgmr.msra.gmra.mrb[0].mxu0 %vm29_vm0, %v15_v8  ;;  %161 = vmatmul.mubr.msk.f32.vlgmr.msra.gmra.mrb[0].mxu1 %vm29_vm0, %v17_v9 }
  0xdf   :  { %v159_v11 = vpop.f32.mrb[0].mxu0  ;;  %v162_v12 = vpop.f32.mrb[0].mxu1 }
  0xe0   :  { %v114_v13 = vadd.f32 %v159_v11, %v136_v10  ;;  %v124_v14 = vadd.f32 %v162_v12, %v136_v10  ;;  %v108_v15 = vpop.f32.mrb[1].mxu0  ;;  %v118_v16 = vpop.f32.mrb[1].mxu1 }
  0xe1   :  { %v109_v17 = vadd.f32 %v136_v10, %v108_v15  ;;  %v119_v18 = vadd.f32 %v136_v10, %v118_v16 }
  0xe2   :  { %129 = vst.msk [vmem:[%s241_s3 + $0x8] sm:$0xff] %vm127_vm1, %v114_v13  ;;  %131 = vst.msk [vmem:[%s241_s3 + $0x18] sm:$0xff] %vm127_vm1, %v124_v14 }
  0xe3   :  { %128 = vst.msk [vmem:[%s241_s3] sm:$0xff] %vm127_vm1, %v109_v17  ;;  %130 = vst.msk [vmem:[%s241_s3 + $0x10] sm:$0xff] %vm127_vm1, %v119_v18 }

// kernel: decoder_forward.26
= control target key start
LH: loop header
LB: loop body
LE: loop exit
PB: predicated region body
PF: predicated region fallthrough
CT: control target
= control target key end

     0   :  { %vm30_vm0 = vcmask 261120   ;;  %s212_s1 = inlined_call_operand.vmem [shape: f32[32,32], index: 1, kind: input, shape index: {}]   ;;  %s213_s0 = inlined_call_operand.vmem [shape: f32[16,32], index: 0, kind: input, shape index: {}]   ;;  %s214_s2 = inlined_call_operand.vmem [shape: f32[1,32], index: 2, kind: input, shape index: {}]   ;;  %s215_s3 = inlined_call_operand.vmem [shape: f32[16,32], index: 3, kind: input, shape index: {}]   ;;  %s216_s4 = inlined_call_operand.vmem [shape: f32[16,32], index: 4, kind: output, shape index: {}]  }
   0x1   :  { %v19_v0 = vld [vmem:[%s212_s1] sm:$0xff]  ;;  %v20_v1 = vld [vmem:[%s212_s1 + $0x8] sm:$0xff]  ;;  %v21_v2 = vld [vmem:[%s212_s1 + $0x10] sm:$0xff] }
   0x2   :  { %v142_v3 = vpack.c.bf16 %v20_v1, %v19_v0  ;;  %v22_v4 = vld [vmem:[%s212_s1 + $0x18] sm:$0xff]  ;;  %v17_v5 = vld [vmem:[%s213_s0] sm:$0xff]  ;;  %v18_v7 = vld [vmem:[%s213_s0 + $0x8] sm:$0xff] }
   0x3   :  { %v146_v6 = vpack.c.bf16 %v22_v4, %v21_v2  ;;  %139 = vmatprep.mubr.msk.f32.mxu0 %vm30_vm0, %v17_v5  ;;  %v122_v8 = vld [vmem:[%s214_s2] ss:$0 sm:$0xff]  ;;  %v113_v10 = vld [vmem:[%s215_s3 + $0x8] sm:$0xff] }
   0x4   :  { %143 = vmatprep.subr.bf16.mxu0 %v142_v3  ;;  %v112_v13 = vld [vmem:[%s215_s3] sm:$0xff] }
   0x5   :  { %145 = vmatpush3.bf16.msra.mxu0 %v142_v3 }
   0x6   :  { %147 = vmatprep.subr.bf16.mxu0 %v146_v6 }
   0x9   :  { %149 = vmatpush3.bf16.msra.mxu0 %v146_v6 }
   0xc   :  { %140 = vmatmul.mubr.msk.f32.vlgmr.msra.gmra.mrb[0].mxu0 %vm30_vm0, %v18_v7 }
  0xdf   :  { %v141_v9 = vpop.f32.mrb[0].mxu0 }
  0xe0   :  { %v109_v11 = vadd.f32 %v141_v9, %v122_v8  ;;  %v103_v12 = vpop.f32.mrb[1].mxu0 }
  0xe1   :  { %v104_v14 = vadd.f32 %v122_v8, %v103_v12 }
  0xe2   :  { %v115_v15 = vadd.f32 %v113_v10, %v109_v11 }
  0xe3   :  { %v114_v16 = vadd.f32 %v112_v13, %v104_v14 }
  0xe4   :  { %117 = vst.msk [vmem:[%s216_s4 + $0x8] sm:$0xff] %vm30_vm0, %v115_v15 }
  0xe5   :  { %116 = vst.msk [vmem:[%s216_s4] sm:$0xff] %vm30_vm0, %v114_v16 }

// kernel: decoder_forward.30
= control target key start
LH: loop header
LB: loop body
LE: loop exit
PB: predicated region body
PF: predicated region fallthrough
CT: control target
= control target key end

     0   :  { %s896_s18 = smov 0   ;;  %s898_s19 = smov 0   ;;  %s975_s0 = inlined_call_operand.vmem [shape: f32[2,4,8,8], index: 0, kind: input, shape index: {}]   ;;  %s976_s1 = inlined_call_operand.vmem [shape: f32[2,4,16,8], index: 1, kind: input, shape index: {}]   ;;  %s977_s2 = inlined_call_operand.vmem [shape: f32[2,4,16,8], index: 2, kind: input, shape index: {}]   ;;  %s978_s3 = inlined_call_operand.vmem [shape: s32[2,8,16], index: 3, kind: input, shape index: {}]   ;;  %s979_s4 = inlined_call_operand.vmem [shape: f32[2,4,8,8], index: 4, kind: output, shape index: {0}]   ;;  %s980_s5 = inlined_call_operand.vmem [shape: f32[2,4,8,16], index: 5, kind: output, shape index: {1}]  }
   0x1   :  { %s900_s20 = smov 0   ;;  %s902_s21 = smov 0  }
   0x2   :  { %s904_s22 = smov 0  }
   0x3 LB: > { %s25_s23 = sadd.s32 1, %s853_s20  ;;  %s28_s24 = sadd.s32 1, %s857_s21  ;;  %s861_s22 = sphi %s904_s22, %s16_s22   ;;  %s857_s21 = sphi %s902_s21, %s984_s21   ;;  %s853_s20 = sphi %s900_s20, %s983_s20   ;;  %s849_s19 = sphi %s898_s19, %s982_s19   ;;  %s845_s18 = sphi %s896_s18, %s981_s18  }
   0x4   : > { %p26_p0 = scmp.ge.s32.totalorder %s25_s23, 4  ;;  %p729_p1 = scmp.ge.s32.totalorder %s861_s22, 1 }
   0x5   : > { %p252_p2 = scmp.lt.s32.totalorder %s861_s22, 9 }
   0x6   : > { %s986_s23 = smov (%p26_p0, %s25_s23), 0  ;;  %s988_s24 = smov (!%p26_p0, %s28_s24), %s857_s21 }
   0x7   : > { %p253_p3 = pnand %p729_p1, %p252_p2  ;;  %p30_p4 = scmp.ge.s32.totalorder %s988_s24, 2 }
   0x8   : > { %p316_p5 = scmp.lt.s32.totalorder (!%p253_p3), %s849_s19, 1  ;;  %p318_p6 = scmp.lt.s32.totalorder (!%p253_p3), %s845_s18, 3  ;;  %v863_v0 = vmov (!%p253_p3), 0.0|0.0   ;;  %vm864_vm0 = vmmov (!%p253_p3), 0   ;;  %v865_v1 = vmov (!%p253_p3), 0.0   ;;  %vm368_vm1 = vcmask (!%p253_p3), 64512  }
   0x9   : > { %s990_s24 = smov (%p30_p4, %s988_s24), 0  ;;  %256 = sbr.rel (%p253_p3) target bundleno = 772 (0x304), region = 36 }
   0xa   : > { %769 = vmatprep.subr.bf16.mxu0 (!%p253_p3), %v863_v0  ;;  %759 = vmatprep.mubr.msk.f32.mxu0 (!%p253_p3), %vm864_vm0, %v865_v1  ;;  %vm771_vm2 = vmpackc.low (!%p253_p3), %vm368_vm1, %vm368_vm1  ;;  %vm451_vm4 = vcmask (!%p253_p3), 130048  }
   0xb   : > { %773 = vmatprep.subr.bf16.mxu1 (!%p253_p3), %v863_v0  ;;  %766 = vmatprep.mubr.msk.f32.mxu1 (!%p253_p3), %vm864_vm0, %v865_v1 }
  0x10   : > { %s992_s19 = smov (!%p316_p5, %s849_s19), 1  ;;  %s994_s18 = smov (!%p318_p6, %s845_s18), 3 }
  0x11   : > { %s733_s25 = sshll.u32 %s992_s19, 3  ;;  %s730_s26 = sshll.u32 %s992_s19, 2 }
  0x12   : > { %s732_s27 = sshll.u32 %s994_s18, 1  ;;  %s321_s28 = sadd.s32 %s730_s26, %s994_s18 }
  0x13   : > { %s926_s29 = sadd.s32 %s733_s25, %s732_s27  ;;  %s928_s30 = sshll.u32 %s321_s28, 3 }
  0x14   : > { %s734_s6 = sshll.u32 %s926_s29, 3  ;;  %s323_s12 = scalar_lea.vmem %s975_s0, %s928_s30 }
  0x15   : > { %s332_s9 = scalar_lea.vmem %s976_s1, %s734_s6  ;;  %v362_v5 = vld [vmem:[%s323_s12] sm:$0xff]  ;;  %s345_s15 = scalar_lea.vmem %s978_s3, %s733_s25 }
  0x16   : > { %v364_v2 = vld [vmem:[%s332_s9] sm:$0xff]  ;;  %v365_v3 = vld [vmem:[%s332_s9 + $0x8] sm:$0xff]  ;;  %v363_v6 = vmul.f32 0.35355338, %v362_v5  ;;  %s341_s18 = scalar_lea.vmem %s977_s2, %s734_s6  ;;  %s361_s26 = scalar_lea.vmem %s980_s5, %s928_s30 }
  0x17   : > { %v770_v4 = vpack.c.bf16 %v365_v3, %v364_v2  ;;  %v448_v7 = vld [vmem:[%s345_s15] sm:$0xff]  ;;  %v367_v18 = vld [vmem:[%s341_s18 + $0x8] sm:$0xff]  ;;  %s353_s29 = scalar_lea.vmem %s979_s4, %s928_s30 }
  0x18   : > { %vm449_vm3 = vcmp.ne.s32.totalorder %v448_v7, 0  ;;  %v366_v17 = vld [vmem:[%s341_s18] sm:$0xff] }
  0x19   : > { %772 = vmatpush3.bf16.xpose.msk.msra.mxu0 %vm771_vm2, %v770_v4  ;;  %v774_v19 = vpack.c.bf16 %v367_v18, %v366_v17 }
  0x1b   : > { %775 = vmatpush3.bf16.msra.mxu1 %v774_v19 }
  0x20   : > { %760 = vmatmul.mubr.msk.f32.vlgmr.msra.gmra.mrb[0].mxu0 %vm368_vm1, %v363_v6 }
  0xf3   : > { %v444_v8 = vpop.f32.mrb[0].mxu0 }
  0xf4   : > { %v450_v9 = vsel %vm449_vm3, -1e+18, %v444_v8  ;;  %v761_v10 = vpop.f32.mrb[1].mxu0 }
  0xf5   : > { %v452_v11 = vsel %vm451_vm4, %v450_v9, -inf }
  0xf6   : > { %453 = vmax.xlane.f32.xlu0 %v452_v11 }
 0x183   : > { %v454_v12 = vpop.xlane.xlu0 %453 }
 0x184   : > { %v455_v13 = vsub.f32 %v450_v9, %v454_v12 }
 0x186   : > { %v456_v14 = vmul.f32 1.442695, %v455_v13 }
 0x188   : > { %819 = vpow2.f32 %v456_v14 }
 0x192   : > { %v820_v15 = vpop.eup %819 }
 0x193   : > { %v458_v16 = vsel %vm451_vm4, %v820_v15, 0.0 }
 0x194   : > { %459 = vadd.xlane.f32.xlu0 %v458_v16 }
 0x221   : > { %v460_v20 = vpop.xlane.xlu0 %459 }
 0x222   : > { %821 = vrcp.f32 %v460_v20 }
 0x22c   : > { %v822_v21 = vpop.eup %821 }
 0x22d   : > { %v462_v22 = vmul.f32 %v822_v21, %v820_v15 }
 0x22f   : > { %463 = vst.msk [vmem:[%s361_s26] sm:$0xff] %vm451_vm4, %v462_v22  ;;  %767 = vmatmul.mubr.msk.f32.vlgmr.msra.gmra.mrb[0].mxu1 %vm451_vm4, %v462_v22 }
 0x302   : > { %v533_v23 = vpop.f32.mrb[0].mxu1 }
 0x303   : > { %537 = vst.msk [vmem:[%s353_s29] sm:$0xff] %vm368_vm1, %v533_v23  ;;  %v768_v24 = vpop.f32.mrb[1].mxu1 }
 0x304 PF: > { %s16_s22 = sadd.s32 1, %s861_s22   ;;  %s981_s18 = smov %s853_s20 }
 0x305   : > { %p13_p7 = scmp.ge.s32.totalorder %s16_s22, 10   ;;  %s982_s19 = smov %s857_s21 }
 0x306   : > { %s983_s20 = smov %s986_s23  ;;  %s984_s21 = smov %s990_s24 }
 0x307   :  { %15 = sbr.rel (!%p13_p7) target bundleno = 3 (0x3), region = 87 }

// kernel: decoder_forward.43
= control target key start
LH: loop header
LB: loop body
LE: loop exit
PB: predicated region body
PF: predicated region fallthrough
CT: control target
= control target key end

     0   :  { %vm17_vm0 = vcmask 261120   ;;  %s167_s0 = inlined_call_operand.vmem [shape: f32[16,32], index: 0, kind: input, shape index: {}]   ;;  %s168_s1 = inlined_call_operand.vmem [shape: f32[1,32], index: 1, kind: input, shape index: {}]   ;;  %s169_s2 = inlined_call_operand.vmem [shape: f32[1,32], index: 2, kind: input, shape index: {}]   ;;  %s170_s3 = inlined_call_operand.hbm [shape: f32[16,32], index: 3, kind: output, shape index: {}]  }
   0x1   :  { %v15_v0 = vld [vmem:[%s167_s0] sm:$0xff]  ;;  %v16_v1 = vld [vmem:[%s167_s0 + $0x8] sm:$0xff] }
   0x2   :  { %8 = vsyncpa [#allocation3], 0  ;;  %v18_v2 = vsel %vm17_vm0, %v15_v0, 0.0  ;;  %v21_v3 = vsel %vm17_vm0, %v16_v1, 0.0  ;;  %v81_v21 = vld [vmem:[%s168_s1] ss:$0 sm:$0xff] }
   0x3   :  { %19 = vadd.xlane.f32.xlu0 %v18_v2  ;;  %v82_v23 = vld [vmem:[%s169_s2] ss:$0 sm:$0xff]  ;;  %s114_s19 = smov [#allocation2]  }
   0x4   :  { %s70_s20 = sshll.u32 %s114_s19, 4  ;;  %s71_s20 = int_to_ptr.vmem [resolvable:$true] %s70_s20 }
   0x5   :  { %s90_s21 = scalar_lea.vmem %s71_s20, 256  ;;  %p95_p1 = scmp.lt.s32.totalorder %s71_s20, %s71_s20 }
   0x6   :  { %p91_p0 = scmp.ne.s32.totalorder %s71_s20, %s90_s21  ;;  %p96_p2 = scmp.lt.s32.totalorder %s90_s21, %s90_s21 }
   0x7   :  { %22 = vadd.xlane.f32.xlu0 %v21_v3 }
   0x8   :  { %p97_p3 = por %p96_p2, %p95_p1 }
   0xa   :  { %p98_p4 = pnand %p97_p3, %p91_p0 }
  0x90   :  { %v20_v4 = vpop.xlane.xlu0 %19 }
  0x91   :  { %v25_v5 = vmul.f32 0.03125, %v20_v4 }
  0x93   :  { %v27_v6 = vsub.f32 %v15_v0, %v25_v5 }
  0x94   :  { %v23_v7 = vpop.xlane.xlu0 %22 }
  0x95   :  { %v26_v8 = vmul.f32 0.03125, %v23_v7  ;;  %v29_v9 = vmul.f32 %v27_v6, %v27_v6 }
  0x97   :  { %v28_v10 = vsub.f32 %v16_v1, %v26_v8  ;;  %v31_v11 = vsel %vm17_vm0, %v29_v9, 0.0 }
  0x98   :  { %32 = vadd.xlane.f32.xlu1 %v31_v11 }
  0x99   :  { %v30_v12 = vmul.f32 %v28_v10, %v28_v10 }
  0x9b   :  { %v34_v13 = vsel %vm17_vm0, %v30_v12, 0.0 }
  0x9c   :  { %35 = vadd.xlane.f32.xlu1 %v34_v13 }
 0x125   :  { %v33_v14 = vpop.xlane.xlu1 %32 }
 0x126   :  { %v37_v15 = vmul.f32 0.03125, %v33_v14 }
 0x128   :  { %v39_v16 = vadd.f32 1e-06, %v37_v15 }
 0x129   :  { %v36_v17 = vpop.xlane.xlu1 %35 }
 0x12a   :  { %86 = vrsqrt.f32 %v39_v16  ;;  %v38_v18 = vmul.f32 0.03125, %v36_v17 }
 0x12c   :  { %v40_v19 = vadd.f32 1e-06, %v38_v18 }
 0x12e   :  { %88 = vrsqrt.f32 %v40_v19 }
 0x134   :  { %v87_v20 = vpop.eup %86 }
 0x135   :  { %v43_v22 = vmul.f32 %v87_v20, %v27_v6 }
 0x137   :  { %v52_v24 = vmul.f32 %v81_v21, %v43_v22 }
 0x138   :  { %v89_v25 = vpop.eup %88 }
 0x139   :  { %v44_v26 = vmul.f32 %v89_v25, %v28_v10  ;;  %v61_v27 = vadd.f32 %v82_v23, %v52_v24 }
 0x13b   :  { %v53_v28 = vmul.f32 %v81_v21, %v44_v26  ;;  %63 = vst.msk [vmem:[#allocation2] sm:$0xff] %vm17_vm0, %v61_v27 }
 0x13d   :  { %v62_v29 = vadd.f32 %v82_v23, %v53_v28 }
 0x13f   :  { %64 = vst.msk [vmem:[#allocation2 + $0x8] sm:$0xff] %vm17_vm0, %v62_v29 }
 0x140   :  { %101 = shalt.err (!%p98_p4)
}
 0x141   :  { %s102_s22 = scalar_lea.hbm %s170_s3, 256 }
 0x142   :  { %p103_p5 = scmp.ne.s32.totalorder %s170_s3, %s102_s22  ;;  %p106_p6 = scmp.lt.u32.totalorder %s102_s22, %s170_s3 }
 0x144   :  { %p108_p7 = pnand %p106_p6, %p103_p5 }
 0x146   :  { %111 = shalt.err (!%p108_p7)
}
 0x147   :  { %s115_s27 = smov 128   ;;  %s116_s28 = smov 8  }
 0x148   :  { %76 = dma.vmem_to_hbm [thread:$0]  %s71_s20, 256, %s170_s3, [#allocation3], %s115_s27, %s115_s27, %s116_s28  }
 0x149   :  { %112 = dma.done.wait [#allocation3], 256  }
 0x14a   :  { %113 = vsyncadd [#allocation3], 4294967040 }
 0x14b   :  { %80 = vsyncpa [#allocation3], 1 }

// kernel: decoder_forward.32
= control target key start
LH: loop header
LB: loop body
LE: loop exit
PB: predicated region body
PF: predicated region fallthrough
CT: control target
= control target key end

     0   :  { %vm28_vm0 = vcmask 261120   ;;  %vm199_vm1 = vcmask 523264   ;;  %s493_s0 = inlined_call_operand.vmem [shape: f32[16,32], index: 0, kind: input, shape index: {}]   ;;  %s494_s3 = inlined_call_operand.vmem [shape: f32[32,64], index: 3, kind: input, shape index: {}]   ;;  %s495_s1 = inlined_call_operand.vmem [shape: f32[1,32], index: 1, kind: input, shape index: {}]   ;;  %s496_s2 = inlined_call_operand.vmem [shape: f32[1,32], index: 2, kind: input, shape index: {}]   ;;  %s497_s5 = inlined_call_operand.vmem [shape: f32[64,32], index: 5, kind: input, shape index: {}]   ;;  %s498_s4 = inlined_call_operand.vmem [shape: f32[1,64], index: 4, kind: input, shape index: {}]   ;;  %s499_s6 = inlined_call_operand.vmem [shape: f32[1,32], index: 6, kind: input, shape index: {}]   ;;  %s500_s7 = inlined_call_operand.vmem [shape: f32[16,32], index: 7, kind: output, shape index: {}]  }
   0x1   :  { %v418_v0 = vld [vmem:[%s493_s0] sm:$0xff]  ;;  %v423_v1 = vld [vmem:[%s493_s0 + $0x8] sm:$0xff]  ;;  %v76_v16 = vld [vmem:[%s494_s3 + $0x10] sm:$0xff] }
   0x2   :  { %v29_v2 = vsel %vm28_vm0, %v418_v0, 0.0  ;;  %v32_v3 = vsel %vm28_vm0, %v423_v1, 0.0  ;;  %v74_v14 = vld [vmem:[%s494_s3] sm:$0xff]  ;;  %v75_v15 = vld [vmem:[%s494_s3 + $0x8] sm:$0xff]  ;;  %v77_v18 = vld [vmem:[%s494_s3 + $0x18] sm:$0xff] }
   0x3   :  { %30 = vadd.xlane.f32.xlu0 %v29_v2  ;;  %v343_v17 = vpack.c.bf16 %v75_v15, %v74_v14  ;;  %v347_v19 = vpack.c.bf16 %v77_v18, %v76_v16  ;;  %v289_v27 = vld [vmem:[%s495_s1] ss:$0 sm:$0xff]  ;;  %v185_v37 = vld [vmem:[%s497_s5 + $0x8] sm:$0xff]  ;;  %v186_v38 = vld [vmem:[%s497_s5 + $0x10] sm:$0xff] }
   0x4   :  { %v290_v29 = vld [vmem:[%s496_s2] ss:$0 sm:$0xff]  ;;  %v187_v40 = vld [vmem:[%s497_s5 + $0x18] sm:$0xff]  ;;  %v189_v43 = vld [vmem:[%s497_s5 + $0x28] sm:$0xff] }
   0x5   :  { %344 = vmatprep.subr.bf16.mxu0 %v343_v17  ;;  %v184_v36 = vld [vmem:[%s497_s5] sm:$0xff]  ;;  %v355_v41 = vpack.c.bf16 %v187_v40, %v186_v38  ;;  %v190_v45 = vld [vmem:[%s497_s5 + $0x30] sm:$0xff]  ;;  %v191_v46 = vld [vmem:[%s497_s5 + $0x38] sm:$0xff] }
   0x6   :  { %346 = vmatpush3.bf16.msra.mxu0 %v343_v17  ;;  %v351_v39 = vpack.c.bf16 %v185_v37, %v184_v36  ;;  %v188_v42 = vld [vmem:[%s497_s5 + $0x20] sm:$0xff]  ;;  %v363_v47 = vpack.c.bf16 %v191_v46, %v190_v45 }
   0x7   :  { %33 = vadd.xlane.f32.xlu0 %v32_v3  ;;  %348 = vmatprep.subr.bf16.mxu0 %v347_v19  ;;  %v359_v44 = vpack.c.bf16 %v189_v43, %v188_v42  ;;  %v291_v48 = vld [vmem:[%s498_s4] ss:$0 sm:$0xff] }
   0x8   :  { %352 = vmatprep.subr.bf16.mxu1 %v351_v39 }
   0x9   :  { %354 = vmatpush3.bf16.msra.mxu1 %v351_v39 }
   0xa   :  { %350 = vmatpush3.bf16.msra.mxu0 %v347_v19  ;;  %356 = vmatprep.subr.bf16.mxu1 %v355_v41 }
   0xd   :  { %358 = vmatpush3.bf16.msra.mxu1 %v355_v41 }
   0xe   :  { %360 = vmatprep.subr.bf16.mxu1 %v359_v44 }
  0x11   :  { %362 = vmatpush3.bf16.msra.mxu1 %v359_v44 }
  0x12   :  { %364 = vmatprep.subr.bf16.mxu1 %v363_v47 }
  0x15   :  { %366 = vmatpush3.bf16.msra.mxu1 %v363_v47 }
  0x90   :  { %v31_v4 = vpop.xlane.xlu0 %30 }
  0x91   :  { %v36_v5 = vmul.f32 0.03125, %v31_v4 }
  0x93   :  { %v38_v6 = vsub.f32 %v418_v0, %v36_v5 }
  0x94   :  { %v34_v7 = vpop.xlane.xlu0 %33 }
  0x95   :  { %v37_v8 = vmul.f32 0.03125, %v34_v7  ;;  %v40_v9 = vmul.f32 %v38_v6, %v38_v6 }
  0x97   :  { %v39_v10 = vsub.f32 %v423_v1, %v37_v8  ;;  %v42_v11 = vsel %vm28_vm0, %v40_v9, 0.0  ;;  %v294_v9 = vld [vmem:[%s499_s6] ss:$0 sm:$0xff] }
  0x98   :  { %43 = vadd.xlane.f32.xlu1 %v42_v11 }
  0x99   :  { %v41_v12 = vmul.f32 %v39_v10, %v39_v10 }
  0x9b   :  { %v45_v13 = vsel %vm28_vm0, %v41_v12, 0.0 }
  0x9c   :  { %46 = vadd.xlane.f32.xlu1 %v45_v13 }
 0x125   :  { %v44_v20 = vpop.xlane.xlu1 %43 }
 0x126   :  { %v48_v21 = vmul.f32 0.03125, %v44_v20 }
 0x128   :  { %v50_v22 = vadd.f32 1e-06, %v48_v21 }
 0x129   :  { %v47_v23 = vpop.xlane.xlu1 %46 }
 0x12a   :  { %367 = vrsqrt.f32 %v50_v22  ;;  %v49_v24 = vmul.f32 0.03125, %v47_v23 }
 0x12c   :  { %v51_v25 = vadd.f32 1e-06, %v49_v24 }
 0x12e   :  { %369 = vrsqrt.f32 %v51_v25 }
 0x134   :  { %v368_v26 = vpop.eup %367 }
 0x135   :  { %v54_v28 = vmul.f32 %v368_v26, %v38_v6 }
 0x137   :  { %v63_v30 = vmul.f32 %v289_v27, %v54_v28 }
 0x138   :  { %v370_v31 = vpop.eup %369 }
 0x139   :  { %v55_v32 = vmul.f32 %v370_v31, %v39_v10  ;;  %v72_v33 = vadd.f32 %v290_v29, %v63_v30 }
 0x13b   :  { %v64_v34 = vmul.f32 %v289_v27, %v55_v32  ;;  %321 = vmatprep.mubr.msk.f32.mxu0 %vm28_vm0, %v72_v33 }
 0x13d   :  { %v73_v35 = vadd.f32 %v290_v29, %v64_v34 }
 0x13f   :  { %322 = vmatmul.mubr.msk.f32.vlgmr.msra.gmra.mrb[0].mxu0 %vm28_vm0, %v73_v35 }
 0x212   :  { %v323_v49 = vpop.f32.mrb[0].mxu0 }
 0x213   :  { %v163_v50 = vadd.f32 %v323_v49, %v291_v48  ;;  %v157_v51 = vpop.f32.mrb[1].mxu0 }
 0x214   :  { %v158_v52 = vadd.f32 %v291_v48, %v157_v51 }
 0x215   :  { %v169_v53 = vmul.f32 0.044715, %v163_v50  ;;  %v167_v6 = vmul.f32 0.5, %v163_v50 }
 0x216   :  { %v168_v54 = vmul.f32 0.044715, %v158_v52  ;;  %v166_v4 = vmul.f32 0.5, %v158_v52 }
 0x217   :  { %v171_v55 = vmul.f32 %v169_v53, %v163_v50 }
 0x218   :  { %v170_v56 = vmul.f32 %v168_v54, %v158_v52 }
 0x219   :  { %v173_v57 = vmul.f32 %v171_v55, %v163_v50 }
 0x21a   :  { %v172_v58 = vmul.f32 %v170_v56, %v158_v52 }
 0x21b   :  { %v175_v59 = vadd.f32 %v173_v57, %v163_v50 }
 0x21c   :  { %v174_v60 = vadd.f32 %v172_v58, %v158_v52 }
 0x21d   :  { %v177_v61 = vmul.f32 0.7978846, %v175_v59 }
 0x21e   :  { %v176_v62 = vmul.f32 0.7978846, %v174_v60 }
 0x21f   :  { %371 = vtanh.f32 %v177_v61 }
 0x220   :  { %373 = vtanh.f32 %v176_v62 }
 0x229   :  { %v372_v63 = vpop.eup %371 }
 0x22a   :  { %v374_v2 = vpop.eup %373  ;;  %v181_v3 = vadd.f32 1.0, %v372_v63 }
 0x22b   :  { %v180_v5 = vadd.f32 1.0, %v374_v2 }
 0x22c   :  { %v183_v8 = vmul.f32 %v181_v3, %v167_v6 }
 0x22d   :  { %v182_v7 = vmul.f32 %v180_v5, %v166_v4 }
 0x22f   :  { %340 = vmatprep.mubr.msk.f32.mxu1 %vm199_vm1, %v182_v7 }
 0x230   :  { %341 = vmatmul.mubr.msk.f32.vlgmr.msra.gmra.mrb[0].mxu1 %vm199_vm1, %v183_v8 }
 0x303   :  { %v342_v10 = vpop.f32.mrb[0].mxu1 }
 0x304   :  { %v278_v11 = vadd.f32 %v342_v10, %v294_v9  ;;  %v272_v12 = vpop.f32.mrb[1].mxu1 }
 0x305   :  { %v273_v13 = vadd.f32 %v294_v9, %v272_v12 }
 0x306   :  { %v282_v14 = vadd.f32 %v278_v11, %v423_v1 }
 0x307   :  { %v281_v15 = vadd.f32 %v273_v13, %v418_v0 }
 0x308   :  { %284 = vst.msk [vmem:[%s500_s7 + $0x8] sm:$0xff] %vm28_vm0, %v282_v14 }
 0x309   :  { %283 = vst.msk [vmem:[%s500_s7] sm:$0xff] %vm28_vm0, %v281_v15 }

</bundles_post_ra>
